<compile_context>
chip_gen: v5e
topology: v5e:2x2
jax: 0.10.0
libtpu: 0.0.40
codegen_flags: <defaults>
</compile_context>

<pallas_src>
import math
import functools

import jax
import jax.numpy as jnp
from jax.experimental import pallas as pl
from jax.experimental.pallas import tpu as pltpu


# ----------------------------- config ---------------------------------------
class GemmaConfig:
    def __init__(self):
        self.vocab_size = 256          # unused (inputs_embeds provided)
        self.hidden_size = 32
        self.intermediate_size = 64
        self.num_hidden_layers = 2
        self.num_attention_heads = 4
        self.head_dim = 8
        self.num_key_value_heads = 2
        self.max_position_embeddings = 2048
        self.rope_theta = 10000.0
        self.rms_norm_eps = 1e-6
        self.attention_dropout = 0.0   # dropout is a no-op (eval / p=0)
        self.attention_bias = False
        self.pad_token_id = 0


# ----------------------------- per-layer kernel ------------------------------
def gemma_layer_kernel(
    x_ref, cos_ref, sin_ref, bias_ref,
    wqkv_ref, wo_ref, wgu_ref, wd_ref, lni_ref, lnp_ref, lnf_ref,
    o_ref, h_scr, *,
    num_layers, num_heads, num_kv_heads, head_dim, n_rep,
    eps, normalizer, scale, inter,
):
    f32 = jnp.float32
    bf16 = jnp.bfloat16
    l = pl.program_id(1)
    half = head_dim // 2
    q_dim = num_heads * head_dim
    kv_dim = num_kv_heads * head_dim
    gelu_c = math.sqrt(2.0 / math.pi)

    # ---- layer 0: seed the VMEM-resident residual stream (embed scaling) ----
    @pl.when(l == 0)
    def _():
        h_scr[...] = x_ref[0].astype(f32) * normalizer

    h = h_scr[...]                                   # [S, H] f32 residual stream
    S = h.shape[0]

    # rotary tables: only [S, hd] was DMA'd; the two halves of emb=cat(freqs,
    # freqs) are identical, so just the first half is needed.
    cos1 = cos_ref[0][:, :half].astype(f32)          # [S, hd/2]
    sin1 = sin_ref[0][:, :half].astype(f32)
    cs_a = cos1 - sin1                               # first-half RoPE coefficient

    # causal mask built in-kernel (free VPU iota) + tiny additive key bias.
    row = jax.lax.broadcasted_iota(jnp.int32, (S, S), 0)
    col = jax.lax.broadcasted_iota(jnp.int32, (S, S), 1)
    mask = jnp.where(col <= row, 0.0, -1e9).astype(f32) + bias_ref[0].astype(f32)

    def rmsnorm(x, w):                               # Gemma RMSNorm: * (1 + weight)
        var = jnp.mean(x * x, axis=-1, keepdims=True)
        return x * jax.lax.rsqrt(var + eps) * (1.0 + w)

    def rope(xh):                                    # [S, hd] -> [S, hd]
        # reference rotate_half "bug": cat(-x1, x1) of the FIRST half.
        #   out[:, :half] = x1*cos - x1*sin ; out[:, half:] = x2*cos + x1*sin
        x1 = xh[:, :half]
        x2 = xh[:, half:]
        return jnp.concatenate([x1 * cs_a, x2 * cos1 + x1 * sin1], axis=-1)

    # ---------------- self-attention block ----------------
    xn = rmsnorm(h, lni_ref[0].astype(f32))          # [S, H] f32
    qkv = jnp.dot(xn.astype(bf16), wqkv_ref[0],      # bf16 x bf16 -> f32 on MXU
                  preferred_element_type=f32)        # [S, (nh+2nkv)*hd]
    q = qkv[:, :q_dim]
    k = qkv[:, q_dim:q_dim + kv_dim]
    v = qkv[:, q_dim + kv_dim:].astype(bf16)

    # TODO(synk): at production head counts use lax.fori_loop / batched einsum
    #             over a head axis instead of fully unrolled Python loops.
    k_heads, v_heads = [], []
    for g in range(num_kv_heads):
        k_heads.append(rope(k[:, g * head_dim:(g + 1) * head_dim]).astype(bf16))
        v_heads.append(v[:, g * head_dim:(g + 1) * head_dim])

    # TODO(synk): for long S switch to a flash-style online-softmax loop over
    #             KV blocks instead of materializing the full [S,S] score tile.
    ctxs = []
    for head in range(num_heads):
        g = head // n_rep                            # GQA: kv head for this q head
        qh = rope(q[:, head * head_dim:(head + 1) * head_dim]).astype(bf16)
        s = jnp.einsum("qd,kd->qk", qh, k_heads[g],
                       preferred_element_type=f32) * scale + mask
        m = jnp.max(s, axis=-1, keepdims=True)
        p = jnp.exp(s - m)
        p = p * pl.reciprocal(jnp.sum(p, axis=-1, keepdims=True), approx=True)
        ctxs.append(jnp.dot(p.astype(bf16), v_heads[g],
                            preferred_element_type=f32))        # [S, hd]
    # ONE deep-K o_proj matmul instead of nh tiny K=hd accumulations.
    ctx = jnp.concatenate(ctxs, axis=-1).astype(bf16)            # [S, nh*hd]
    h = h + jnp.dot(ctx, wo_ref[0], preferred_element_type=f32)  # residual

    # ---------------- MLP block ----------------
    xn = rmsnorm(h, lnp_ref[0].astype(f32))
    gu = jnp.dot(xn.astype(bf16), wgu_ref[0],
                 preferred_element_type=f32)         # [S, 2I] fused gate|up
    gate = gu[:, :inter]
    up = gu[:, inter:]
    gact = 0.5 * gate * (1.0 + jnp.tanh(gelu_c * (gate + 0.044715 * gate * gate * gate)))
    h = h + jnp.dot((gact * up).astype(bf16), wd_ref[0],
                    preferred_element_type=f32)

    h_scr[...] = h                                   # carry to next layer step

    # ---- last layer: final RMSNorm, single store of the output block ----
    @pl.when(l == num_layers - 1)
    def _():
        o_ref[0] = rmsnorm(h, lnf_ref[...].astype(f32)).astype(o_ref.dtype)


# ----------------------------- weight preparation ----------------------------
def prepare_weights(params, cfg):
    """One-time: fuse qkv / gate-up, transpose to [in, out], stack over layers,
    cast matmul weights to bf16 (LN weights stay f32 for f32 VPU math)."""
    H = cfg.hidden_size
    bf16 = jnp.bfloat16
    layers = params["layers"]
    wqkv = jnp.stack([jnp.concatenate(
        [l["q_proj"], l["k_proj"], l["v_proj"]], axis=0).T for l in layers]).astype(bf16)
    wo = jnp.stack([l["o_proj"].T for l in layers]).astype(bf16)
    wgu = jnp.stack([jnp.concatenate(
        [l["gate_proj"], l["up_proj"]], axis=0).T for l in layers]).astype(bf16)
    wd = jnp.stack([l["down_proj"].T for l in layers]).astype(bf16)
    lni = jnp.stack([l["input_ln"].reshape(1, H) for l in layers])
    lnp = jnp.stack([l["post_ln"].reshape(1, H) for l in layers])
    lnf = params["final_norm"].reshape(1, H)
    return dict(wqkv=wqkv, wo=wo, wgu=wgu, wd=wd, lni=lni, lnp=lnp, lnf=lnf)


def round_matmul_weights_to_bf16(params):
    """Reference gets the SAME bf16-rounded weight values as the kernel."""
    def rd(w): return w.astype(jnp.bfloat16).astype(jnp.float32)
    layers = [dict(
        q_proj=rd(l["q_proj"]), k_proj=rd(l["k_proj"]), v_proj=rd(l["v_proj"]),
        o_proj=rd(l["o_proj"]), gate_proj=rd(l["gate_proj"]),
        up_proj=rd(l["up_proj"]), down_proj=rd(l["down_proj"]),
        input_ln=l["input_ln"], post_ln=l["post_ln"]) for l in params["layers"]]
    return dict(layers=layers, final_norm=params["final_norm"])


# ----------------------------- forward wrapper --------------------------------
def rotary_cos_sin(position_ids, head_dim, rope_theta, dtype):
    inv_freq = 1.0 / (
        rope_theta ** (jnp.arange(0, head_dim, 2, dtype=jnp.float32) / head_dim))
    freqs = position_ids.astype(jnp.float32)[:, :, None] * inv_freq[None, None, :]
    emb = jnp.concatenate([freqs, freqs], axis=-1)          # [B, S, hd]
    return jnp.cos(emb).astype(dtype), jnp.sin(emb).astype(dtype)


def gemma_forward(prepped, cfg, inputs_embeds, pad_bias, position_ids):
    """pad_bias: [B, S] additive key bias (0 / -inf style); the causal part of
    the attention mask is generated inside the kernel."""
    B, S, H = inputs_embeds.shape
    nh, nkv, hd = cfg.num_attention_heads, cfg.num_key_value_heads, cfg.head_dim
    I = cfg.intermediate_size
    L = cfg.num_hidden_layers
    n_rep = nh // nkv
    dtype = inputs_embeds.dtype
    qkv_dim = (nh + 2 * nkv) * hd

    cos, sin = rotary_cos_sin(position_ids, hd, cfg.rope_theta, jnp.float32)  # [B,S,hd]
    bias3 = pad_bias.reshape(B, 1, S).astype(jnp.float32)

    kernel = functools.partial(
        gemma_layer_kernel,
        num_layers=L, num_heads=nh, num_kv_heads=nkv, head_dim=hd, n_rep=n_rep,
        eps=cfg.rms_norm_eps, normalizer=float(cfg.hidden_size) ** 0.5,
        scale=1.0 / math.sqrt(hd), inter=I)

    return pl.pallas_call(
        kernel,
        grid=(B, L),                                         # batch x layers
        in_specs=[
            pl.BlockSpec((1, S, H), lambda b, l: (b, 0, 0)),       # inputs_embeds
            pl.BlockSpec((1, S, hd), lambda b, l: (b, 0, 0)),      # cos [B,S,hd]
            pl.BlockSpec((1, S, hd), lambda b, l: (b, 0, 0)),      # sin [B,S,hd]
            pl.BlockSpec((1, 1, S), lambda b, l: (b, 0, 0)),       # additive key bias
            pl.BlockSpec((1, H, qkv_dim), lambda b, l: (l, 0, 0)), # fused Wqkv (bf16, streamed)
            pl.BlockSpec((1, nh * hd, H), lambda b, l: (l, 0, 0)), # Wo (bf16, streamed)
            pl.BlockSpec((1, H, 2 * I), lambda b, l: (l, 0, 0)),   # fused Wgate|up (bf16)
            pl.BlockSpec((1, I, H), lambda b, l: (l, 0, 0)),       # Wdown (bf16)
            pl.BlockSpec((1, 1, H), lambda b, l: (l, 0, 0)),       # input LN (f32)
            pl.BlockSpec((1, 1, H), lambda b, l: (l, 0, 0)),       # post LN (f32)
            pl.BlockSpec((1, H), lambda b, l: (0, 0)),             # final LN (f32)
        ],
        out_specs=pl.BlockSpec((1, S, H), lambda b, l: (b, 0, 0)), # constant over l
        out_shape=jax.ShapeDtypeStruct((B, S, H), dtype),
        scratch_shapes=[pltpu.VMEM((S, H), jnp.float32)],          # residual stream carry
        compiler_params=pltpu.CompilerParams(
            dimension_semantics=("parallel", "arbitrary")),        # 2 TCs share B on v7x
    )(inputs_embeds, cos, sin, bias3,
      prepped["wqkv"], prepped["wo"], prepped["wgu"], prepped["wd"],
      prepped["lni"], prepped["lnp"], prepped["lnf"])


# ----------------------------- pure-JAX reference ----------------------------
def ref_forward(params, cfg, inputs_embeds, attention_mask, position_ids):
    B, S, H = inputs_embeds.shape
    nh, nkv, hd = cfg.num_attention_heads, cfg.num_key_value_heads, cfg.head_dim
    n_rep = nh // nkv
    eps = cfg.rms_norm_eps
    h = inputs_embeds * (cfg.hidden_size ** 0.5)

    cos2, sin2 = rotary_cos_sin(position_ids, hd, cfg.rope_theta, h.dtype)
    cos = cos2[:, None, :, :]
    sin = sin2[:, None, :, :]

    def rms(x, w):
        v = jnp.mean(x * x, -1, keepdims=True)
        return x * jax.lax.rsqrt(v + eps) * (1.0 + w)

    def rot_half(x):  # reference "bug": cat(-x1, x1) of the FIRST half
        x1 = x[..., : hd // 2]
        return jnp.concatenate([-x1, x1], axis=-1)

    for layer in params["layers"]:
        res = h
        x = rms(h, layer["input_ln"])
        q = (x @ layer["q_proj"].T).reshape(B, S, nh, hd).transpose(0, 2, 1, 3)
        k = (x @ layer["k_proj"].T).reshape(B, S, nkv, hd).transpose(0, 2, 1, 3)
        v = (x @ layer["v_proj"].T).reshape(B, S, nkv, hd).transpose(0, 2, 1, 3)
        q = q * cos + rot_half(q) * sin
        k = k * cos + rot_half(k) * sin
        k = jnp.repeat(k, n_rep, axis=1)
        v = jnp.repeat(v, n_rep, axis=1)
        w = jnp.einsum("bhqd,bhkd->bhqk", q, k) / math.sqrt(hd) + attention_mask
        w = jax.nn.softmax(w, axis=-1)
        o = jnp.einsum("bhqk,bhkd->bhqd", w, v).transpose(0, 2, 1, 3).reshape(B, S, nh * hd)
        h = res + o @ layer["o_proj"].T

        res = h
        x = rms(h, layer["post_ln"])
        gate = x @ layer["gate_proj"].T
        up = x @ layer["up_proj"].T
        g = 0.5 * gate * (1.0 + jnp.tanh(math.sqrt(2.0 / math.pi) * (gate + 0.044715 * gate ** 3)))
        h = res + (g * up) @ layer["down_proj"].T

    return rms(h, params["final_norm"])


# ----------------------------- param init -----------------------------------
def init_params(key, cfg):
    H, I = cfg.hidden_size, cfg.intermediate_size
    nh, nkv, hd = cfg.num_attention_heads, cfg.num_key_value_heads, cfg.head_dim
    layers = []
    for _ in range(cfg.num_hidden_layers):
        key, *ks = jax.random.split(key, 10)
        layers.append(dict(
            q_proj=0.05 * jax.random.normal(ks[0], (nh * hd, H), jnp.float32),
            k_proj=0.05 * jax.random.normal(ks[1], (nkv * hd, H), jnp.float32),
            v_proj=0.05 * jax.random.normal(ks[2], (nkv * hd, H), jnp.float32),
            o_proj=0.05 * jax.random.normal(ks[3], (H, nh * hd), jnp.float32),
            gate_proj=0.05 * jax.random.normal(ks[4], (I, H), jnp.float32),
            up_proj=0.05 * jax.random.normal(ks[5], (I, H), jnp.float32),
            down_proj=0.05 * jax.random.normal(ks[6], (H, I), jnp.float32),
            input_ln=0.1 * jax.random.normal(ks[7], (H,), jnp.float32),
            post_ln=0.1 * jax.random.normal(ks[8], (H,), jnp.float32),
        ))
    key, kf = jax.random.split(key)
    return dict(layers=layers,
                final_norm=0.1 * jax.random.normal(kf, (H,), jnp.float32))


# ----------------------------- main ------------------------------------------
if __name__ == "__main__":
    cfg = GemmaConfig()
    B, S, H = 2, 8, cfg.hidden_size

    key = jax.random.PRNGKey(0)
    key, k_embed = jax.random.split(key)
    params = init_params(key, cfg)
    prepped = prepare_weights(params, cfg)   # one-time fuse/transpose/stack (bf16)

    inputs_embeds = jax.random.normal(k_embed, (B, S, H), jnp.float32)
    position_ids = jnp.broadcast_to(jnp.arange(S, dtype=jnp.int32)[None, :], (B, S))
    pad_bias = jnp.zeros((B, S), jnp.float32)   # additive key bias (no padding here)

    fwd = jax.jit(lambda pw, x, b, pid: gemma_forward(pw, cfg, x, b, pid))
    out = jax.block_until_ready(fwd(prepped, inputs_embeds, pad_bias, position_ids))

    # Reference: same bf16-rounded matmul weights, f32 math, dense additive mask
    # (causal + key bias) matching what the kernel builds in-kernel.
    causal = jnp.tril(jnp.ones((S, S), jnp.float32))
    attn_mask = (jnp.where(causal[None, None] > 0, 0.0, -1e9)
                 + pad_bias[:, None, None, :])                       # [B,1,S,S]
    ref = ref_forward(round_matmul_weights_to_bf16(params), cfg,
                      inputs_embeds, attn_mask, position_ids)

    assert out.shape == (B, S, H)
    # bf16 activations into the MXU + approx EUP reciprocal in the softmax limit
    # agreement to ~1e-2 relative; real bugs give O(1) error.
    assert jnp.allclose(out, ref, atol=3e-2, rtol=3e-2), "mismatch vs reference"

    print("KERNEL_OK")
</pallas_src>

<mosaic_0001>
module attributes {stable_mosaic.version = 11 : i64} {
  func.func @gemma_layer_kernel(%arg0: i32, %arg1: i32, %arg2: memref<1x8x32xf32, #tpu.memory_space<vmem>>, %arg3: memref<1x8x8xf32, #tpu.memory_space<vmem>>, %arg4: memref<1x8x8xf32, #tpu.memory_space<vmem>>, %arg5: memref<1x1x8xf32, #tpu.memory_space<vmem>>, %arg6: memref<1x32x64xbf16, #tpu.memory_space<vmem>>, %arg7: memref<1x32x32xbf16, #tpu.memory_space<vmem>>, %arg8: memref<1x32x128xbf16, #tpu.memory_space<vmem>>, %arg9: memref<1x64x32xbf16, #tpu.memory_space<vmem>>, %arg10: memref<1x1x32xf32, #tpu.memory_space<vmem>>, %arg11: memref<1x1x32xf32, #tpu.memory_space<vmem>>, %arg12: memref<1x32xf32, #tpu.memory_space<vmem>>, %arg13: memref<1x8x32xf32, #tpu.memory_space<vmem>>, %arg14: memref<8x32xf32, #tpu.memory_space<vmem>>) attributes {dimension_semantics = [#tpu.dimension_semantics<parallel>, #tpu.dimension_semantics<arbitrary>], iteration_bounds = array<i64: 2, 2>, scalar_prefetch = 0 : i64, scratch_operands = 1 : i64, tpu.core_type = #tpu.core_type<tc>, window_params = [{transform_indices = @transform_0, window_bounds = array<i64: 1, 8, 32>}, {transform_indices = @transform_1, window_bounds = array<i64: 1, 8, 8>}, {transform_indices = @transform_2, window_bounds = array<i64: 1, 8, 8>}, {transform_indices = @transform_3, window_bounds = array<i64: 1, 1, 8>}, {transform_indices = @transform_4, window_bounds = array<i64: 1, 32, 64>}, {transform_indices = @transform_5, window_bounds = array<i64: 1, 32, 32>}, {transform_indices = @transform_6, window_bounds = array<i64: 1, 32, 128>}, {transform_indices = @transform_7, window_bounds = array<i64: 1, 64, 32>}, {transform_indices = @transform_8, window_bounds = array<i64: 1, 1, 32>}, {transform_indices = @transform_9, window_bounds = array<i64: 1, 1, 32>}, {pipeline_mode = #tpu.pipeline_mode<synchronous>, transform_indices = @transform_10, window_bounds = array<i64: 1, 32>}, {transform_indices = @transform_11, window_bounds = array<i64: 1, 8, 32>}]} {
    %c0_i32 = arith.constant 0 : i32
    %0 = arith.cmpi eq, %arg1, %c0_i32 : i32
    %1 = arith.extui %0 : i1 to i32
    %c0_i32_0 = arith.constant 0 : i32
    %2 = arith.cmpi ne, %1, %c0_i32_0 : i32
    scf.if %2 {
      %c0_69 = arith.constant 0 : index
      %c0_70 = arith.constant 0 : index
      %c0_71 = arith.constant 0 : index
      %216 = vector.load %arg2[%c0_69, %c0_70, %c0_71] : memref<1x8x32xf32, #tpu.memory_space<vmem>>, vector<1x8x32xf32>
      %217 = vector.shape_cast %216 : vector<1x8x32xf32> to vector<8x32xf32>
      %cst_72 = arith.constant 5.65685415 : f32
      %218 = vector.broadcast %cst_72 : f32 to vector<8x32xf32>
      %219 = arith.mulf %217, %218 : vector<8x32xf32>
      %c0_73 = arith.constant 0 : index
      %c0_74 = arith.constant 0 : index
      %220 = vector.load %arg14[%c0_73, %c0_74] : memref<8x32xf32, #tpu.memory_space<vmem>>, vector<8x32xf32>
      tpu.vector_store %arg14[%c0_73, %c0_74], %219 {strides = array<i32>} : memref<8x32xf32, #tpu.memory_space<vmem>>, vector<8x32xf32>,
    } else {
    }
    %c0 = arith.constant 0 : index
    %c0_1 = arith.constant 0 : index
    %3 = vector.load %arg14[%c0, %c0_1] : memref<8x32xf32, #tpu.memory_space<vmem>>, vector<8x32xf32>
    %c0_2 = arith.constant 0 : index
    %c0_3 = arith.constant 0 : index
    %c0_4 = arith.constant 0 : index
    %4 = vector.load %arg3[%c0_2, %c0_3, %c0_4] : memref<1x8x8xf32, #tpu.memory_space<vmem>>, vector<1x8x8xf32>
    %5 = vector.shape_cast %4 : vector<1x8x8xf32> to vector<8x8xf32>
    %6 = vector.extract_strided_slice %5 {offsets = [0, 0], sizes = [8, 4], strides = [1, 1]} : vector<8x8xf32> to vector<8x4xf32>
    %c0_5 = arith.constant 0 : index
    %c0_6 = arith.constant 0 : index
    %c0_7 = arith.constant 0 : index
    %7 = vector.load %arg4[%c0_5, %c0_6, %c0_7] : memref<1x8x8xf32, #tpu.memory_space<vmem>>, vector<1x8x8xf32>
    %8 = vector.shape_cast %7 : vector<1x8x8xf32> to vector<8x8xf32>
    %9 = vector.extract_strided_slice %8 {offsets = [0, 0], sizes = [8, 4], strides = [1, 1]} : vector<8x8xf32> to vector<8x4xf32>
    %10 = arith.subf %6, %9 : vector<8x4xf32>
    %11 = tpu.iota {dimensions = array<i32: 0>} : vector<8x8xi32>
    %12 = tpu.iota {dimensions = array<i32: 1>} : vector<8x8xi32>
    %13 = arith.cmpi sle, %12, %11 : vector<8x8xi32>
    %cst = arith.constant 0.000000e+00 : f32
    %cst_8 = arith.constant -1.000000e+09 : f32
    %14 = vector.broadcast %cst : f32 to vector<8x8xf32>
    %15 = vector.broadcast %cst_8 : f32 to vector<8x8xf32>
    %16 = arith.select %13, %14, %15 : vector<8x8xi1>, vector<8x8xf32>
    %c0_9 = arith.constant 0 : index
    %c0_10 = arith.constant 0 : index
    %c0_11 = arith.constant 0 : index
    %17 = vector.load %arg5[%c0_9, %c0_10, %c0_11] : memref<1x1x8xf32, #tpu.memory_space<vmem>>, vector<1x1x8xf32>
    %18 = vector.shape_cast %17 : vector<1x1x8xf32> to vector<1x8xf32>
    %19 = vector.broadcast %18 : vector<1x8xf32> to vector<8x8xf32>
    %20 = arith.addf %16, %19 : vector<8x8xf32>
    %c0_12 = arith.constant 0 : index
    %c0_13 = arith.constant 0 : index
    %c0_14 = arith.constant 0 : index
    %21 = vector.load %arg10[%c0_12, %c0_13, %c0_14] : memref<1x1x32xf32, #tpu.memory_space<vmem>>, vector<1x1x32xf32>
    %22 = vector.shape_cast %21 : vector<1x1x32xf32> to vector<1x32xf32>
    %23 = arith.mulf %3, %3 : vector<8x32xf32>
    %cst_15 = arith.constant dense<0.000000e+00> : vector<8xf32>
    %24 = vector.multi_reduction <add>, %23, %cst_15 [1] : vector<8x32xf32> to vector<8xf32>
    %25 = vector.shape_cast %24 : vector<8xf32> to vector<8x1xf32>
    %cst_16 = arith.constant 3.200000e+01 : f32
    %26 = vector.broadcast %cst_16 : f32 to vector<8x1xf32>
    %27 = arith.divf %25, %26 : vector<8x1xf32>
    %cst_17 = arith.constant 9.99999997E-7 : f32
    %28 = vector.broadcast %cst_17 : f32 to vector<8x1xf32>
    %29 = arith.addf %27, %28 : vector<8x1xf32>
    %30 = math.rsqrt %29 : vector<8x1xf32>
    %31 = vector.broadcast %30 : vector<8x1xf32> to vector<8x32xf32>
    %32 = arith.mulf %3, %31 : vector<8x32xf32>
    %cst_18 = arith.constant 1.000000e+00 : f32
    %33 = vector.broadcast %cst_18 : f32 to vector<1x32xf32>
    %34 = arith.addf %33, %22 : vector<1x32xf32>
    %35 = vector.broadcast %34 : vector<1x32xf32> to vector<8x32xf32>
    %36 = arith.mulf %32, %35 : vector<8x32xf32>
    %37 = arith.truncf %36 : vector<8x32xf32> to vector<8x32xbf16>
    %c0_19 = arith.constant 0 : index
    %c0_20 = arith.constant 0 : index
    %c0_21 = arith.constant 0 : index
    %38 = vector.load %arg6[%c0_19, %c0_20, %c0_21] : memref<1x32x64xbf16, #tpu.memory_space<vmem>>, vector<1x32x64xbf16>
    %39 = vector.shape_cast %38 : vector<1x32x64xbf16> to vector<32x64xbf16>
    %cst_22 = arith.constant dense<0.000000e+00> : vector<8x64xf32>
    %40 = tpu.matmul %37, %39, %cst_22 {dimension_numbers = #tpu.dot_dimension_numbers<[1], [0], [0], [1], [0, 0, 1, 1], [], []>} : vector<8x32xbf16>, vector<32x64xbf16>, vector<8x64xf32> -> vector<8x64xf32>
    %41 = vector.extract_strided_slice %40 {offsets = [0, 0], sizes = [8, 32], strides = [1, 1]} : vector<8x64xf32> to vector<8x32xf32>
    %42 = vector.extract_strided_slice %40 {offsets = [0, 32], sizes = [8, 16], strides = [1, 1]} : vector<8x64xf32> to vector<8x16xf32>
    %43 = vector.extract_strided_slice %40 {offsets = [0, 48], sizes = [8, 16], strides = [1, 1]} : vector<8x64xf32> to vector<8x16xf32>
    %44 = arith.truncf %43 : vector<8x16xf32> to vector<8x16xbf16>
    %45 = vector.extract_strided_slice %42 {offsets = [0, 0], sizes = [8, 8], strides = [1, 1]} : vector<8x16xf32> to vector<8x8xf32>
    %46 = vector.extract_strided_slice %45 {offsets = [0, 0], sizes = [8, 4], strides = [1, 1]} : vector<8x8xf32> to vector<8x4xf32>
    %47 = vector.extract_strided_slice %45 {offsets = [0, 4], sizes = [8, 4], strides = [1, 1]} : vector<8x8xf32> to vector<8x4xf32>
    %48 = arith.mulf %46, %10 : vector<8x4xf32>
    %49 = arith.mulf %47, %6 : vector<8x4xf32>
    %50 = arith.mulf %46, %9 : vector<8x4xf32>
    %51 = arith.addf %49, %50 : vector<8x4xf32>
    %52 = tpu.concatenate %48, %51 in 1 : vector<8x4xf32>, vector<8x4xf32> -> vector<8x8xf32>
    %53 = arith.truncf %52 : vector<8x8xf32> to vector<8x8xbf16>
    %54 = vector.extract_strided_slice %44 {offsets = [0, 0], sizes = [8, 8], strides = [1, 1]} : vector<8x16xbf16> to vector<8x8xbf16>
    %55 = vector.extract_strided_slice %42 {offsets = [0, 8], sizes = [8, 8], strides = [1, 1]} : vector<8x16xf32> to vector<8x8xf32>
    %56 = vector.extract_strided_slice %55 {offsets = [0, 0], sizes = [8, 4], strides = [1, 1]} : vector<8x8xf32> to vector<8x4xf32>
    %57 = vector.extract_strided_slice %55 {offsets = [0, 4], sizes = [8, 4], strides = [1, 1]} : vector<8x8xf32> to vector<8x4xf32>
    %58 = arith.mulf %56, %10 : vector<8x4xf32>
    %59 = arith.mulf %57, %6 : vector<8x4xf32>
    %60 = arith.mulf %56, %9 : vector<8x4xf32>
    %61 = arith.addf %59, %60 : vector<8x4xf32>
    %62 = tpu.concatenate %58, %61 in 1 : vector<8x4xf32>, vector<8x4xf32> -> vector<8x8xf32>
    %63 = arith.truncf %62 : vector<8x8xf32> to vector<8x8xbf16>
    %64 = vector.extract_strided_slice %44 {offsets = [0, 8], sizes = [8, 8], strides = [1, 1]} : vector<8x16xbf16> to vector<8x8xbf16>
    %65 = vector.extract_strided_slice %41 {offsets = [0, 0], sizes = [8, 8], strides = [1, 1]} : vector<8x32xf32> to vector<8x8xf32>
    %66 = vector.extract_strided_slice %65 {offsets = [0, 0], sizes = [8, 4], strides = [1, 1]} : vector<8x8xf32> to vector<8x4xf32>
    %67 = vector.extract_strided_slice %65 {offsets = [0, 4], sizes = [8, 4], strides = [1, 1]} : vector<8x8xf32> to vector<8x4xf32>
    %68 = arith.mulf %66, %10 : vector<8x4xf32>
    %69 = arith.mulf %67, %6 : vector<8x4xf32>
    %70 = arith.mulf %66, %9 : vector<8x4xf32>
    %71 = arith.addf %69, %70 : vector<8x4xf32>
    %72 = tpu.concatenate %68, %71 in 1 : vector<8x4xf32>, vector<8x4xf32> -> vector<8x8xf32>
    %73 = arith.truncf %72 : vector<8x8xf32> to vector<8x8xbf16>
    "tpu.trace_start"() <{level = 10 : i32, message = "qd,kd->qk"}> : () -> ()
    %cst_23 = arith.constant dense<0.000000e+00> : vector<8x8xf32>
    %74 = tpu.matmul %73, %53, %cst_23 {dimension_numbers = #tpu.dot_dimension_numbers<[1], [1], [0], [0], [0, 0, 1, 0], [], []>} : vector<8x8xbf16>, vector<8x8xbf16>, vector<8x8xf32> -> vector<8x8xf32>
    "tpu.trace_stop"() : () -> ()
    %cst_24 = arith.constant 0.353553385 : f32
    %75 = vector.broadcast %cst_24 : f32 to vector<8x8xf32>
    %76 = arith.mulf %74, %75 : vector<8x8xf32>
    %77 = arith.addf %76, %20 : vector<8x8xf32>
    %cst_25 = arith.constant dense<0xFF800000> : vector<8xf32>
    %78 = vector.multi_reduction <maximumf>, %77, %cst_25 [1] : vector<8x8xf32> to vector<8xf32>
    %79 = vector.shape_cast %78 : vector<8xf32> to vector<8x1xf32>
    %80 = vector.broadcast %79 : vector<8x1xf32> to vector<8x8xf32>
    %81 = arith.subf %77, %80 : vector<8x8xf32>
    %82 = math.exp %81 : vector<8x8xf32>
    %cst_26 = arith.constant dense<0.000000e+00> : vector<8xf32>
    %83 = vector.multi_reduction <add>, %82, %cst_26 [1] : vector<8x8xf32> to vector<8xf32>
    %84 = vector.shape_cast %83 : vector<8xf32> to vector<8x1xf32>
    %85 = tpu.reciprocal %84 {approx = true} : vector<8x1xf32> -> vector<8x1xf32>
    %86 = vector.broadcast %85 : vector<8x1xf32> to vector<8x8xf32>
    %87 = arith.mulf %82, %86 : vector<8x8xf32>
    %88 = arith.truncf %87 : vector<8x8xf32> to vector<8x8xbf16>
    %cst_27 = arith.constant dense<0.000000e+00> : vector<8x8xf32>
    %89 = tpu.matmul %88, %54, %cst_27 {dimension_numbers = #tpu.dot_dimension_numbers<[1], [0], [0], [1], [0, 0, 1, 1], [], []>} : vector<8x8xbf16>, vector<8x8xbf16>, vector<8x8xf32> -> vector<8x8xf32>
    %90 = vector.extract_strided_slice %41 {offsets = [0, 8], sizes = [8, 8], strides = [1, 1]} : vector<8x32xf32> to vector<8x8xf32>
    %91 = vector.extract_strided_slice %90 {offsets = [0, 0], sizes = [8, 4], strides = [1, 1]} : vector<8x8xf32> to vector<8x4xf32>
    %92 = vector.extract_strided_slice %90 {offsets = [0, 4], sizes = [8, 4], strides = [1, 1]} : vector<8x8xf32> to vector<8x4xf32>
    %93 = arith.mulf %91, %10 : vector<8x4xf32>
    %94 = arith.mulf %92, %6 : vector<8x4xf32>
    %95 = arith.mulf %91, %9 : vector<8x4xf32>
    %96 = arith.addf %94, %95 : vector<8x4xf32>
    %97 = tpu.concatenate %93, %96 in 1 : vector<8x4xf32>, vector<8x4xf32> -> vector<8x8xf32>
    %98 = arith.truncf %97 : vector<8x8xf32> to vector<8x8xbf16>
    "tpu.trace_start"() <{level = 10 : i32, message = "qd,kd->qk"}> : () -> ()
    %cst_28 = arith.constant dense<0.000000e+00> : vector<8x8xf32>
    %99 = tpu.matmul %98, %53, %cst_28 {dimension_numbers = #tpu.dot_dimension_numbers<[1], [1], [0], [0], [0, 0, 1, 0], [], []>} : vector<8x8xbf16>, vector<8x8xbf16>, vector<8x8xf32> -> vector<8x8xf32>
    "tpu.trace_stop"() : () -> ()
    %cst_29 = arith.constant 0.353553385 : f32
    %100 = vector.broadcast %cst_29 : f32 to vector<8x8xf32>
    %101 = arith.mulf %99, %100 : vector<8x8xf32>
    %102 = arith.addf %101, %20 : vector<8x8xf32>
    %cst_30 = arith.constant dense<0xFF800000> : vector<8xf32>
    %103 = vector.multi_reduction <maximumf>, %102, %cst_30 [1] : vector<8x8xf32> to vector<8xf32>
    %104 = vector.shape_cast %103 : vector<8xf32> to vector<8x1xf32>
    %105 = vector.broadcast %104 : vector<8x1xf32> to vector<8x8xf32>
    %106 = arith.subf %102, %105 : vector<8x8xf32>
    %107 = math.exp %106 : vector<8x8xf32>
    %cst_31 = arith.constant dense<0.000000e+00> : vector<8xf32>
    %108 = vector.multi_reduction <add>, %107, %cst_31 [1] : vector<8x8xf32> to vector<8xf32>
    %109 = vector.shape_cast %108 : vector<8xf32> to vector<8x1xf32>
    %110 = tpu.reciprocal %109 {approx = true} : vector<8x1xf32> -> vector<8x1xf32>
    %111 = vector.broadcast %110 : vector<8x1xf32> to vector<8x8xf32>
    %112 = arith.mulf %107, %111 : vector<8x8xf32>
    %113 = arith.truncf %112 : vector<8x8xf32> to vector<8x8xbf16>
    %cst_32 = arith.constant dense<0.000000e+00> : vector<8x8xf32>
    %114 = tpu.matmul %113, %54, %cst_32 {dimension_numbers = #tpu.dot_dimension_numbers<[1], [0], [0], [1], [0, 0, 1, 1], [], []>} : vector<8x8xbf16>, vector<8x8xbf16>, vector<8x8xf32> -> vector<8x8xf32>
    %115 = vector.extract_strided_slice %41 {offsets = [0, 16], sizes = [8, 8], strides = [1, 1]} : vector<8x32xf32> to vector<8x8xf32>
    %116 = vector.extract_strided_slice %115 {offsets = [0, 0], sizes = [8, 4], strides = [1, 1]} : vector<8x8xf32> to vector<8x4xf32>
    %117 = vector.extract_strided_slice %115 {offsets = [0, 4], sizes = [8, 4], strides = [1, 1]} : vector<8x8xf32> to vector<8x4xf32>
    %118 = arith.mulf %116, %10 : vector<8x4xf32>
    %119 = arith.mulf %117, %6 : vector<8x4xf32>
    %120 = arith.mulf %116, %9 : vector<8x4xf32>
    %121 = arith.addf %119, %120 : vector<8x4xf32>
    %122 = tpu.concatenate %118, %121 in 1 : vector<8x4xf32>, vector<8x4xf32> -> vector<8x8xf32>
    %123 = arith.truncf %122 : vector<8x8xf32> to vector<8x8xbf16>
    "tpu.trace_start"() <{level = 10 : i32, message = "qd,kd->qk"}> : () -> ()
    %cst_33 = arith.constant dense<0.000000e+00> : vector<8x8xf32>
    %124 = tpu.matmul %123, %63, %cst_33 {dimension_numbers = #tpu.dot_dimension_numbers<[1], [1], [0], [0], [0, 0, 1, 0], [], []>} : vector<8x8xbf16>, vector<8x8xbf16>, vector<8x8xf32> -> vector<8x8xf32>
    "tpu.trace_stop"() : () -> ()
    %cst_34 = arith.constant 0.353553385 : f32
    %125 = vector.broadcast %cst_34 : f32 to vector<8x8xf32>
    %126 = arith.mulf %124, %125 : vector<8x8xf32>
    %127 = arith.addf %126, %20 : vector<8x8xf32>
    %cst_35 = arith.constant dense<0xFF800000> : vector<8xf32>
    %128 = vector.multi_reduction <maximumf>, %127, %cst_35 [1] : vector<8x8xf32> to vector<8xf32>
    %129 = vector.shape_cast %128 : vector<8xf32> to vector<8x1xf32>
    %130 = vector.broadcast %129 : vector<8x1xf32> to vector<8x8xf32>
    %131 = arith.subf %127, %130 : vector<8x8xf32>
    %132 = math.exp %131 : vector<8x8xf32>
    %cst_36 = arith.constant dense<0.000000e+00> : vector<8xf32>
    %133 = vector.multi_reduction <add>, %132, %cst_36 [1] : vector<8x8xf32> to vector<8xf32>
    %134 = vector.shape_cast %133 : vector<8xf32> to vector<8x1xf32>
    %135 = tpu.reciprocal %134 {approx = true} : vector<8x1xf32> -> vector<8x1xf32>
    %136 = vector.broadcast %135 : vector<8x1xf32> to vector<8x8xf32>
    %137 = arith.mulf %132, %136 : vector<8x8xf32>
    %138 = arith.truncf %137 : vector<8x8xf32> to vector<8x8xbf16>
    %cst_37 = arith.constant dense<0.000000e+00> : vector<8x8xf32>
    %139 = tpu.matmul %138, %64, %cst_37 {dimension_numbers = #tpu.dot_dimension_numbers<[1], [0], [0], [1], [0, 0, 1, 1], [], []>} : vector<8x8xbf16>, vector<8x8xbf16>, vector<8x8xf32> -> vector<8x8xf32>
    %140 = vector.extract_strided_slice %41 {offsets = [0, 24], sizes = [8, 8], strides = [1, 1]} : vector<8x32xf32> to vector<8x8xf32>
    %141 = vector.extract_strided_slice %140 {offsets = [0, 0], sizes = [8, 4], strides = [1, 1]} : vector<8x8xf32> to vector<8x4xf32>
    %142 = vector.extract_strided_slice %140 {offsets = [0, 4], sizes = [8, 4], strides = [1, 1]} : vector<8x8xf32> to vector<8x4xf32>
    %143 = arith.mulf %141, %10 : vector<8x4xf32>
    %144 = arith.mulf %142, %6 : vector<8x4xf32>
    %145 = arith.mulf %141, %9 : vector<8x4xf32>
    %146 = arith.addf %144, %145 : vector<8x4xf32>
    %147 = tpu.concatenate %143, %146 in 1 : vector<8x4xf32>, vector<8x4xf32> -> vector<8x8xf32>
    %148 = arith.truncf %147 : vector<8x8xf32> to vector<8x8xbf16>
    "tpu.trace_start"() <{level = 10 : i32, message = "qd,kd->qk"}> : () -> ()
    %cst_38 = arith.constant dense<0.000000e+00> : vector<8x8xf32>
    %149 = tpu.matmul %148, %63, %cst_38 {dimension_numbers = #tpu.dot_dimension_numbers<[1], [1], [0], [0], [0, 0, 1, 0], [], []>} : vector<8x8xbf16>, vector<8x8xbf16>, vector<8x8xf32> -> vector<8x8xf32>
    "tpu.trace_stop"() : () -> ()
    %cst_39 = arith.constant 0.353553385 : f32
    %150 = vector.broadcast %cst_39 : f32 to vector<8x8xf32>
    %151 = arith.mulf %149, %150 : vector<8x8xf32>
    %152 = arith.addf %151, %20 : vector<8x8xf32>
    %cst_40 = arith.constant dense<0xFF800000> : vector<8xf32>
    %153 = vector.multi_reduction <maximumf>, %152, %cst_40 [1] : vector<8x8xf32> to vector<8xf32>
    %154 = vector.shape_cast %153 : vector<8xf32> to vector<8x1xf32>
    %155 = vector.broadcast %154 : vector<8x1xf32> to vector<8x8xf32>
    %156 = arith.subf %152, %155 : vector<8x8xf32>
    %157 = math.exp %156 : vector<8x8xf32>
    %cst_41 = arith.constant dense<0.000000e+00> : vector<8xf32>
    %158 = vector.multi_reduction <add>, %157, %cst_41 [1] : vector<8x8xf32> to vector<8xf32>
    %159 = vector.shape_cast %158 : vector<8xf32> to vector<8x1xf32>
    %160 = tpu.reciprocal %159 {approx = true} : vector<8x1xf32> -> vector<8x1xf32>
    %161 = vector.broadcast %160 : vector<8x1xf32> to vector<8x8xf32>
    %162 = arith.mulf %157, %161 : vector<8x8xf32>
    %163 = arith.truncf %162 : vector<8x8xf32> to vector<8x8xbf16>
    %cst_42 = arith.constant dense<0.000000e+00> : vector<8x8xf32>
    %164 = tpu.matmul %163, %64, %cst_42 {dimension_numbers = #tpu.dot_dimension_numbers<[1], [0], [0], [1], [0, 0, 1, 1], [], []>} : vector<8x8xbf16>, vector<8x8xbf16>, vector<8x8xf32> -> vector<8x8xf32>
    %165 = tpu.concatenate %89, %114, %139, %164 in 1 : vector<8x8xf32>, vector<8x8xf32>, vector<8x8xf32>, vector<8x8xf32> -> vector<8x32xf32>
    %166 = arith.truncf %165 : vector<8x32xf32> to vector<8x32xbf16>
    %c0_43 = arith.constant 0 : index
    %c0_44 = arith.constant 0 : index
    %c0_45 = arith.constant 0 : index
    %167 = vector.load %arg7[%c0_43, %c0_44, %c0_45] : memref<1x32x32xbf16, #tpu.memory_space<vmem>>, vector<1x32x32xbf16>
    %168 = vector.shape_cast %167 : vector<1x32x32xbf16> to vector<32x32xbf16>
    %cst_46 = arith.constant dense<0.000000e+00> : vector<8x32xf32>
    %169 = tpu.matmul %166, %168, %cst_46 {dimension_numbers = #tpu.dot_dimension_numbers<[1], [0], [0], [1], [0, 0, 1, 1], [], []>} : vector<8x32xbf16>, vector<32x32xbf16>, vector<8x32xf32> -> vector<8x32xf32>
    %170 = arith.addf %3, %169 : vector<8x32xf32>
    %c0_47 = arith.constant 0 : index
    %c0_48 = arith.constant 0 : index
    %c0_49 = arith.constant 0 : index
    %171 = vector.load %arg11[%c0_47, %c0_48, %c0_49] : memref<1x1x32xf32, #tpu.memory_space<vmem>>, vector<1x1x32xf32>
    %172 = vector.shape_cast %171 : vector<1x1x32xf32> to vector<1x32xf32>
    %173 = arith.mulf %170, %170 : vector<8x32xf32>
    %cst_50 = arith.constant dense<0.000000e+00> : vector<8xf32>
    %174 = vector.multi_reduction <add>, %173, %cst_50 [1] : vector<8x32xf32> to vector<8xf32>
    %175 = vector.shape_cast %174 : vector<8xf32> to vector<8x1xf32>
    %cst_51 = arith.constant 3.200000e+01 : f32
    %176 = vector.broadcast %cst_51 : f32 to vector<8x1xf32>
    %177 = arith.divf %175, %176 : vector<8x1xf32>
    %cst_52 = arith.constant 9.99999997E-7 : f32
    %178 = vector.broadcast %cst_52 : f32 to vector<8x1xf32>
    %179 = arith.addf %177, %178 : vector<8x1xf32>
    %180 = math.rsqrt %179 : vector<8x1xf32>
    %181 = vector.broadcast %180 : vector<8x1xf32> to vector<8x32xf32>
    %182 = arith.mulf %170, %181 : vector<8x32xf32>
    %cst_53 = arith.constant 1.000000e+00 : f32
    %183 = vector.broadcast %cst_53 : f32 to vector<1x32xf32>
    %184 = arith.addf %183, %172 : vector<1x32xf32>
    %185 = vector.broadcast %184 : vector<1x32xf32> to vector<8x32xf32>
    %186 = arith.mulf %182, %185 : vector<8x32xf32>
    %187 = arith.truncf %186 : vector<8x32xf32> to vector<8x32xbf16>
    %c0_54 = arith.constant 0 : index
    %c0_55 = arith.constant 0 : index
    %c0_56 = arith.constant 0 : index
    %188 = vector.load %arg8[%c0_54, %c0_55, %c0_56] : memref<1x32x128xbf16, #tpu.memory_space<vmem>>, vector<1x32x128xbf16>
    %189 = vector.shape_cast %188 : vector<1x32x128xbf16> to vector<32x128xbf16>
    %cst_57 = arith.constant dense<0.000000e+00> : vector<8x128xf32>
    %190 = tpu.matmul %187, %189, %cst_57 {dimension_numbers = #tpu.dot_dimension_numbers<[1], [0], [0], [1], [0, 0, 1, 1], [], []>} : vector<8x32xbf16>, vector<32x128xbf16>, vector<8x128xf32> -> vector<8x128xf32>
    %191 = vector.extract_strided_slice %190 {offsets = [0, 0], sizes = [8, 64], strides = [1, 1]} : vector<8x128xf32> to vector<8x64xf32>
    %192 = vector.extract_strided_slice %190 {offsets = [0, 64], sizes = [8, 64], strides = [1, 1]} : vector<8x128xf32> to vector<8x64xf32>
    %cst_58 = arith.constant 5.000000e-01 : f32
    %193 = vector.broadcast %cst_58 : f32 to vector<8x64xf32>
    %194 = arith.mulf %193, %191 : vector<8x64xf32>
    %cst_59 = arith.constant 4.471500e-02 : f32
    %195 = vector.broadcast %cst_59 : f32 to vector<8x64xf32>
    %196 = arith.mulf %195, %191 : vector<8x64xf32>
    %197 = arith.mulf %196, %191 : vector<8x64xf32>
    %198 = arith.mulf %197, %191 : vector<8x64xf32>
    %199 = arith.addf %191, %198 : vector<8x64xf32>
    %cst_60 = arith.constant 0.797884583 : f32
    %200 = vector.broadcast %cst_60 : f32 to vector<8x64xf32>
    %201 = arith.mulf %200, %199 : vector<8x64xf32>
    %202 = math.tanh %201 : vector<8x64xf32>
    %cst_61 = arith.constant 1.000000e+00 : f32
    %203 = vector.broadcast %cst_61 : f32 to vector<8x64xf32>
    %204 = arith.addf %203, %202 : vector<8x64xf32>
    %205 = arith.mulf %194, %204 : vector<8x64xf32>
    %206 = arith.mulf %205, %192 : vector<8x64xf32>
    %207 = arith.truncf %206 : vector<8x64xf32> to vector<8x64xbf16>
    %c0_62 = arith.constant 0 : index
    %c0_63 = arith.constant 0 : index
    %c0_64 = arith.constant 0 : index
    %208 = vector.load %arg9[%c0_62, %c0_63, %c0_64] : memref<1x64x32xbf16, #tpu.memory_space<vmem>>, vector<1x64x32xbf16>
    %209 = vector.shape_cast %208 : vector<1x64x32xbf16> to vector<64x32xbf16>
    %cst_65 = arith.constant dense<0.000000e+00> : vector<8x32xf32>
    %210 = tpu.matmul %207, %209, %cst_65 {dimension_numbers = #tpu.dot_dimension_numbers<[1], [0], [0], [1], [0, 0, 1, 1], [], []>} : vector<8x64xbf16>, vector<64x32xbf16>, vector<8x32xf32> -> vector<8x32xf32>
    %211 = arith.addf %170, %210 : vector<8x32xf32>
    %c0_66 = arith.constant 0 : index
    %c0_67 = arith.constant 0 : index
    %212 = vector.load %arg14[%c0_66, %c0_67] : memref<8x32xf32, #tpu.memory_space<vmem>>, vector<8x32xf32>
    tpu.vector_store %arg14[%c0_66, %c0_67], %211 {strides = array<i32>} : memref<8x32xf32, #tpu.memory_space<vmem>>, vector<8x32xf32>,
    %c1_i32 = arith.constant 1 : i32
    %213 = arith.cmpi eq, %arg1, %c1_i32 : i32
    %214 = arith.extui %213 : i1 to i32
    %c0_i32_68 = arith.constant 0 : i32
    %215 = arith.cmpi ne, %214, %c0_i32_68 : i32
    scf.if %215 {
      %c0_69 = arith.constant 0 : index
      %c0_70 = arith.constant 0 : index
      %216 = vector.load %arg12[%c0_69, %c0_70] : memref<1x32xf32, #tpu.memory_space<vmem>>, vector<1x32xf32>
      %217 = arith.mulf %211, %211 : vector<8x32xf32>
      %cst_71 = arith.constant dense<0.000000e+00> : vector<8xf32>
      %218 = vector.multi_reduction <add>, %217, %cst_71 [1] : vector<8x32xf32> to vector<8xf32>
      %219 = vector.shape_cast %218 : vector<8xf32> to vector<8x1xf32>
      %cst_72 = arith.constant 3.200000e+01 : f32
      %220 = vector.broadcast %cst_72 : f32 to vector<8x1xf32>
      %221 = arith.divf %219, %220 : vector<8x1xf32>
      %cst_73 = arith.constant 9.99999997E-7 : f32
      %222 = vector.broadcast %cst_73 : f32 to vector<8x1xf32>
      %223 = arith.addf %221, %222 : vector<8x1xf32>
      %224 = math.rsqrt %223 : vector<8x1xf32>
      %225 = vector.broadcast %224 : vector<8x1xf32> to vector<8x32xf32>
      %226 = arith.mulf %211, %225 : vector<8x32xf32>
      %cst_74 = arith.constant 1.000000e+00 : f32
      %227 = vector.broadcast %cst_74 : f32 to vector<1x32xf32>
      %228 = arith.addf %227, %216 : vector<1x32xf32>
      %229 = vector.broadcast %228 : vector<1x32xf32> to vector<8x32xf32>
      %230 = arith.mulf %226, %229 : vector<8x32xf32>
      %c0_75 = arith.constant 0 : index
      %c0_76 = arith.constant 0 : index
      %c0_77 = arith.constant 0 : index
      %231 = vector.load %arg13[%c0_75, %c0_76, %c0_77] : memref<1x8x32xf32, #tpu.memory_space<vmem>>, vector<1x8x32xf32>
      %232 = vector.shape_cast %231 : vector<1x8x32xf32> to vector<8x32xf32>
      %233 = vector.shape_cast %230 : vector<8x32xf32> to vector<1x8x32xf32>
      tpu.vector_store %arg13[%c0_75, %c0_76, %c0_77], %233 {strides = array<i32>} : memref<1x8x32xf32, #tpu.memory_space<vmem>>, vector<1x8x32xf32>,
    } else {
    }
    return
  }
  func.func @transform_0(%arg0: i32, %arg1: i32) -> (i32, i32, i32) {
    %c0_i32 = arith.constant 0 : i32
    %c0_i32_0 = arith.constant 0 : i32
    %c0_i32_1 = arith.constant 0 : i32
    return %arg0, %c0_i32, %c0_i32_0 : i32, i32, i32
  }
  func.func @transform_1(%arg0: i32, %arg1: i32) -> (i32, i32, i32) {
    %c0_i32 = arith.constant 0 : i32
    %c0_i32_0 = arith.constant 0 : i32
    %c0_i32_1 = arith.constant 0 : i32
    return %arg0, %c0_i32, %c0_i32_0 : i32, i32, i32
  }
  func.func @transform_2(%arg0: i32, %arg1: i32) -> (i32, i32, i32) {
    %c0_i32 = arith.constant 0 : i32
    %c0_i32_0 = arith.constant 0 : i32
    %c0_i32_1 = arith.constant 0 : i32
    return %arg0, %c0_i32, %c0_i32_0 : i32, i32, i32
  }
  func.func @transform_3(%arg0: i32, %arg1: i32) -> (i32, i32, i32) {
    %c0_i32 = arith.constant 0 : i32
    %c0_i32_0 = arith.constant 0 : i32
    %c0_i32_1 = arith.constant 0 : i32
    return %arg0, %c0_i32, %c0_i32_0 : i32, i32, i32
  }
  func.func @transform_4(%arg0: i32, %arg1: i32) -> (i32, i32, i32) {
    %c0_i32 = arith.constant 0 : i32
    %c0_i32_0 = arith.constant 0 : i32
    %c0_i32_1 = arith.constant 0 : i32
    return %arg1, %c0_i32, %c0_i32_0 : i32, i32, i32
  }
  func.func @transform_5(%arg0: i32, %arg1: i32) -> (i32, i32, i32) {
    %c0_i32 = arith.constant 0 : i32
    %c0_i32_0 = arith.constant 0 : i32
    %c0_i32_1 = arith.constant 0 : i32
    return %arg1, %c0_i32, %c0_i32_0 : i32, i32, i32
  }
  func.func @transform_6(%arg0: i32, %arg1: i32) -> (i32, i32, i32) {
    %c0_i32 = arith.constant 0 : i32
    %c0_i32_0 = arith.constant 0 : i32
    %c0_i32_1 = arith.constant 0 : i32
    return %arg1, %c0_i32, %c0_i32_0 : i32, i32, i32
  }
  func.func @transform_7(%arg0: i32, %arg1: i32) -> (i32, i32, i32) {
    %c0_i32 = arith.constant 0 : i32
    %c0_i32_0 = arith.constant 0 : i32
    %c0_i32_1 = arith.constant 0 : i32
    return %arg1, %c0_i32, %c0_i32_0 : i32, i32, i32
  }
  func.func @transform_8(%arg0: i32, %arg1: i32) -> (i32, i32, i32) {
    %c0_i32 = arith.constant 0 : i32
    %c0_i32_0 = arith.constant 0 : i32
    %c0_i32_1 = arith.constant 0 : i32
    return %arg1, %c0_i32, %c0_i32_0 : i32, i32, i32
  }
  func.func @transform_9(%arg0: i32, %arg1: i32) -> (i32, i32, i32) {
    %c0_i32 = arith.constant 0 : i32
    %c0_i32_0 = arith.constant 0 : i32
    %c0_i32_1 = arith.constant 0 : i32
    return %arg1, %c0_i32, %c0_i32_0 : i32, i32, i32
  }
  func.func @transform_10(%arg0: i32, %arg1: i32) -> (i32, i32) {
    %c0_i32 = arith.constant 0 : i32
    %c0_i32_0 = arith.constant 0 : i32
    %c0_i32_1 = arith.constant 0 : i32
    return %c0_i32, %c0_i32_0 : i32, i32
  }
  func.func @transform_11(%arg0: i32, %arg1: i32) -> (i32, i32, i32) {
    %c0_i32 = arith.constant 0 : i32
    %c0_i32_0 = arith.constant 0 : i32
    %c0_i32_1 = arith.constant 0 : i32
    return %arg0, %c0_i32, %c0_i32_0 : i32, i32, i32
  }
}

</mosaic_0001>

<bundles_post_ra>
// kernel: _lambda_.1
= control target key start
LH: loop header
LB: loop body
LE: loop exit
PB: predicated region body
PF: predicated region fallthrough
CT: control target
= control target key end

     0   :  { %s2110_s0 = inlined_call_operand.vmem [shape: f32[2,8,32], index: 0, kind: input, shape index: {}]   ;;  %s2111_s1 = inlined_call_operand.vmem [shape: f32[2,8,8], index: 1, kind: input, shape index: {}]   ;;  %s2112_s2 = inlined_call_operand.vmem [shape: f32[2,8,8], index: 2, kind: input, shape index: {}]   ;;  %s2113_s3 = inlined_call_operand.vmem [shape: f32[2,1,8], index: 3, kind: input, shape index: {}]   ;;  %s2114_s4 = inlined_call_operand.vmem [shape: bf16[2,32,64], index: 4, kind: input, shape index: {}]   ;;  %s2115_s5 = inlined_call_operand.vmem [shape: bf16[2,32,32], index: 5, kind: input, shape index: {}]   ;;  %s2116_s6 = inlined_call_operand.vmem [shape: bf16[2,32,128], index: 6, kind: input, shape index: {}]   ;;  %s2117_s7 = inlined_call_operand.vmem [shape: bf16[2,64,32], index: 7, kind: input, shape index: {}]   ;;  %s2118_s8 = inlined_call_operand.vmem [shape: f32[2,1,32], index: 8, kind: input, shape index: {}]   ;;  %s2119_s9 = inlined_call_operand.vmem [shape: f32[2,1,32], index: 9, kind: input, shape index: {}]   ;;  %s2120_s10 = inlined_call_operand.vmem [shape: f32[1,32], index: 10, kind: input, shape index: {}]   ;;  %s2121_s11 = inlined_call_operand.hbm [shape: f32[2,8,32], index: 11, kind: output, shape index: {}]  }
   0x1   :  { %2136 = sst [smem:[#allocation18_spill]] %s2110_s0 }
   0x2   :  { %2137 = sst [smem:[#allocation19_spill]] %s2112_s2 }
   0x3   :  { %2138 = sst [smem:[#allocation20_spill]] %s2114_s4 }
   0x4   :  { %2139 = sst [smem:[#allocation21_spill]] %s2120_s10 }
   0x5   :  { %2140 = sst [smem:[#allocation22_spill]] %s2121_s11 }
   0x6   :  { %16 = vsyncpa [#allocation4], 0 }
   0x7   :  { %18 = vsyncpa [#allocation4 + $0x1], 0  ;;  %s1792_s17 = smov 0   ;;  %s1794_s18 = smov 0  }
   0x8   :  { %s1796_s19 = smov 0   ;;  %s1798_s20 = smov 0  }
   0x9   :  { %s1800_s21 = smov 0   ;;  %s1802_s22 = smov 0  }
   0xa   :  { %s1804_s23 = smov 0   ;;  %s1806_s24 = smov 0  }
   0xb LB: > { %2141 = sst [smem:[#allocation6_spill]] %s1681_s17  ;;  %s1382_s25 = sadd.s32 4294967295, %s1709_s24   ;;  %s1709_s24 = sphi %s1806_s24, %s24_s24   ;;  %s1705_s23 = sphi %s1804_s23, %s2176_s23   ;;  %s1701_s22 = sphi %s1802_s22, %s2175_s22   ;;  %s1697_s21 = sphi %s1800_s21, %s2174_s21   ;;  %s1693_s20 = sphi %s1798_s20, %s2173_s20   ;;  %s1689_s19 = sphi %s1796_s19, %s2172_s19   ;;  %s1685_s18 = sphi %s1794_s18, %s2171_s18   ;;  %s1681_s17 = sphi %s1792_s17, %s2170_s17  }
   0xc   : > { %2142 = sst [smem:[#allocation7_spill]] %s1685_s18  ;;  %s1383_s26 = sadd.s32 4294967294, %s1709_s24  }
   0xd   : > { %2143 = sst [smem:[#allocation8_spill]] %s1689_s19  ;;  %s33_s27 = sadd.s32 1, %s1701_s22 }
   0xe   : > { %2144 = sst [smem:[#allocation9_spill]] %s1697_s21  ;;  %p34_p0 = scmp.ge.s32.totalorder %s33_s27, 2 }
   0xf   : > { %2145 = sst [smem:[#allocation10_spill]] %s1701_s22  ;;  %s36_s28 = sadd.s32 1, %s1705_s23 }
  0x10   : > { %2146 = sst [smem:[#allocation11_spill]] %s1705_s23  ;;  %p334_p1 = scmp.ne.s32.totalorder %s1689_s19, %s1685_s18 }
  0x11   : > { %2147 = sst [smem:[#allocation12_spill]] %s1709_s24  ;;  %p335_p2 = scmp.eq.s32.totalorder %s1382_s25, 3 }
  0x12   : > { %s2178_s27 = smov (%p34_p0, %s33_s27), 0  ;;  %s2180_s28 = smov (!%p34_p0, %s36_s28), %s1705_s23 }
  0x13   : > { %2148 = sst [smem:[#allocation13_spill]] %s2178_s27  ;;  %p1841_p3 = por %p335_p2, %p334_p1 }
  0x14   : > { %p340_p4 = scmp.ne.s32.totalorder %s1685_s18, %s1681_s17  ;;  %p38_p5 = scmp.ge.s32.totalorder %s2180_s28, 2 }
  0x15   : > { %s2149_s29 = scalar_select %p1841_p3, 1, 0 }
  0x16   : > { %p341_p6 = scmp.eq.s32.totalorder %s1383_s26, 3  ;;  %p1386_p7 = scmp.ge.s32.totalorder %s1709_s24, 1 }
  0x17   : > { %2150 = sst [smem:[#allocation14_spill]] %s2149_s29  ;;  %p433_p8 = scmp.lt.s32.totalorder %s1709_s24, 5 }
  0x18   : > { %s2182_s28 = smov (%p38_p5, %s2180_s28), 0  ;;  %p1851_p9 = por %p341_p6, %p340_p4 }
  0x19   : > { %2151 = sst [smem:[#allocation15_spill]] %s2182_s28  ;;  %p434_p10 = pnand %p1386_p7, %p433_p8 }
  0x1a   : > { %s2152_s30 = scalar_select %p1851_p9, 1, 0 }
  0x1b   : > { %s321_s12 = ssub.s32 %s1705_s23, %s2182_s28  ;;  %s324_s13 = sadd.s32 1, %s1689_s19 }
  0x1c   : > { %2153 = sst [smem:[#allocation16_spill]] %s2152_s30  ;;  %p322_p11 = scmp.eq.s32.totalorder %s321_s12, 0 }
  0x1d   : > { %437 = sbr.rel (%p434_p10) target bundleno = 2095 (0x82f), region = 64  ;;  %s2123_s15 = sand.u32 (!%p434_p10), 1, %s1685_s18  }
  0x1e   : > { %s1859_s14 = scalar_select %p322_p11, %s1689_s19, %s324_s13  }
  0x1f   : > { %p509_p12 = scmp.lt.s32.totalorder (!%p434_p10), %s1697_s21, 1  ;;  %s1865_s16 = sshll.u32 (!%p434_p10), %s2123_s15, 3 }
  0x20   : > { %2154 = sst [smem:[#allocation17_spill]] %s1859_s14  ;;  %p524_p13 = scmp.lt.s32.totalorder (!%p434_p10), %s1693_s20, 1 }
  0x21   : > { %s2155_s0 = sld [smem:[#allocation18_spill]] (!%p434_p10)  ;;  %s508_s13 = scalar_lea.vmem (!%p434_p10), [#allocation3], %s1865_s16 }
  0x22   : > { %s1869_s25 = scalar_select %p509_p12, %s1697_s21, 1 }
  0x23   : > { %s1872_s26 = scalar_select %p524_p13, %s1693_s20, 1 }
  0x24   : > { %s1875_s12 = sshll.u32 %s1869_s25, 3  ;;  %s2156_s2 = sld [smem:[#allocation19_spill]] }
  0x25   : > { %s1457_s29 = sshll.u32 %s1872_s26, 4  ;;  %s2157_s4 = sld [smem:[#allocation20_spill]] }
  0x26   : > { %s1902_s10 = scalar_lea.vmem %s2115_s5, %s1457_s29  ;;  %s1907_s19 = scalar_lea.vmem %s2116_s6, %s1457_s29 }
  0x27   : > { %s512_s22 = scalar_lea.vmem %s2155_s0, %s1875_s12  ;;  %s1460_s14 = sshll.u32 %s1872_s26, 5 }
  0x28   : > { %s1913_s24 = scalar_lea.vmem %s2117_s7, %s1460_s14  ;;  %s546_s21 = scalar_lea.vmem %s2118_s8, %s1872_s26 }
  0x29   : > { %s549_s15 = scalar_lea.vmem %s2119_s9, %s1872_s26  ;;  %p1399_p0 = scmp.ne.s32.totalorder %s1693_s20, 0 }
  0x2a   : > { %s520_s11 = scalar_lea.vmem %s2156_s2, %s1875_s12 }
  0x2b   : > { %s1897_s28 = scalar_lea.vmem %s2157_s4, %s1457_s29  ;;  %554 = sbr.rel (%p1399_p0) target bundleno = 52 (0x34), region = 68 }
  0x30   : > { %v555_v0 = vld [vmem:[%s512_s22] sm:$0xff]  ;;  %vm557_vm0 = vcmask 261120  }
  0x31   : > { %v556_v1 = vmul.f32 5.656854, %v555_v0 }
  0x33   : > { %558 = vst.msk [vmem:[#allocation2] sm:$0xff] %vm557_vm0, %v556_v1 }
  0x34 PF: > { %vm576_vm1 = vcmask 261120   ;;  %v1711_v5 = vmov 32.0   ;;  %v1930_v6 = vld [vmem:[%s520_s11] sm:$0xff]  ;;  %s1712_s0 = smov 32   ;;  %s1713_s2 = smov 8   ;;  %v1462_v12 = vld [vmem:[%s1897_s28 + $0x8] sm:$0xff] }
  0x35   : > { %1589 = vrcp.f32 %v1711_v5  ;;  %777 = vrot.lane.b32.xlu1 %v1930_v6, %s1713_s2  ;;  %s1714_s4 = smov 24   ;;  %s2158_s30 = scalar_lea.vmem %s2111_s1, %s1875_s12  ;;  %631 = vmatpush.bf16.msra.mxu0 %v1462_v12  ;;  %v1461_v14 = vld [vmem:[%s1897_s28] sm:$0xff]  ;;  %vm667_vm6 = vcmask 31744   ;;  %vm710_vm7 = vcmask 64512   ;;  %vm752_vm9 = vcmask 1043456  }
  0x36   : > { %931 = vrot.lane.b32.xlu2 %v1930_v6, %s1714_s4  ;;  %v1942_v8 = vld [vmem:[%s2158_s30] sm:$0xff]  ;;  %s1715_s11 = smov 40   ;;  %s1716_s23 = smov 36   ;;  %vm1009_vm10 = vcmask 130048   ;;  %vm1011_vm11 = vcmask 195584   ;;  %vm1150_vm15 = vcmask 523264  }
  0x37   : > { %v1946_v10 = vsub.f32 %v1942_v8, %v1930_v6  ;;  %s1717_s12 = smov 16   ;;  %s1718_s28 = smov 20   ;;  %v574_v23 = vld [vmem:[%s546_s21] sm:$0x1] }
  0x38   : > { %v600_v25 = vadd.f32 1.0, %v574_v23  ;;  %s1719_s17 = smov 4   ;;  %s1720_s18 = smov 12  }
  0x39   : > { %632 = vmatpush.bf16.msra.mxu0 %v1461_v14  ;;  %s1721_s21 = smov 44   ;;  %s1723_s22 = smov 96  }
  0x3a   : > { %v1925_v2 = vld [vmem:[#allocation2] sm:$0xff]  ;;  %v602_v28 = vperm.slane %v600_v25, 0  ;;  %s1724_s29 = smov 120   ;;  %s1725_s30 = smov 88  }
  0x3b   : > { %v575_v3 = vmul.f32 %v1925_v2, %v1925_v2  ;;  %v1590_v7 = vpop.eup %1589  ;;  %s2159_s14 = scalar_lea.vmem %s2113_s3, %s1869_s25  ;;  %s1729_s25 = smov 80  }
  0x3c   : > { %v581_v9 = vmul.f32 32.0, %v1590_v7  ;;  %vm585_vm2 = vweird.f32 %v1590_v7  ;;  %s1731_s26 = smov 64   ;;  %p1452_p1 = scmp.ne.s32.totalorder %s1693_s20, 1 }
  0x3d   : > { %v577_v4 = vsel %vm576_vm1, %v575_v3, 0.0  ;;  %678 = vrot.lane.b32.xlu1 %v1930_v6, %s1715_s11 }
  0x3e   : > { %578 = vadd.xlane.f32.xlu0 %v577_v4  ;;  %645 = vrot.lane.b32.xlu2 %v1942_v8, %s1716_s23  ;;  %v582_v11 = vsub.f32 1.0, %v581_v9  ;;  %s1727_s23 = smov 112  }
  0x40   : > { %v583_v13 = vmul.f32 %v1590_v7, %v582_v11 }
  0x42   : > { %v584_v15 = vadd.f32 %v1590_v7, %v583_v13 }
  0x44   : > { %v1956_v16 = vsel %vm585_vm2, %v1590_v7, %v584_v15 }
  0x45   : > { %640 = vrot.lane.b32.xlu1 %v1946_v10, %s1712_s0 }
  0x4d   : > { %850 = vrot.lane.b32.xlu1 %v1930_v6, %s1717_s12 }
  0x52   : > { %650 = vrot.lane.b32.xlu0 %v1930_v6, %s1712_s0  ;;  %s1722_s0 = smov 28  }
  0x5a   : > { %769 = vrot.lane.b32.xlu0 %v1946_v10, %s1713_s2 }
  0x62   : > { %670 = vrot.lane.b32.xlu0 %v1946_v10, %s1715_s11  ;;  %s1726_s11 = smov 104  }
  0x6a   : > { %923 = vrot.lane.b32.xlu0 %v1946_v10, %s1714_s4 }
  0x72   : > { %846 = vrot.lane.b32.xlu0 %v1942_v8, %s1718_s28 }
  0x90   : > { %v932_v44 = vpop.permute.xlu2 %931 }
  0x98   : > { %v646_v47 = vpop.permute.xlu2 %645 }
  0xa7   : > { %v778_v33 = vpop.permute.xlu1 %777 }
  0xaf   : > { %v679_v34 = vpop.permute.xlu1 %678 }
  0xb1   : > { %v579_v17 = vpop.xlane.xlu0 %578 }
  0xb2   : > { %v587_v18 = vmul.f32 %v1956_v16, %v579_v17 }
  0xb4   : > { %v588_v19 = vadd.f32 1e-06, %v587_v18 }
  0xb6   : > { %1591 = vrsqrt.f32 %v588_v19  ;;  %vm595_vm4 = vweird.f32 %v588_v19 }
  0xb7   : > { %v641_v35 = vpop.permute.xlu1 %640 }
  0xbc   : > { %v1592_v20 = vpop.eup %1591 }
  0xbd   : > { %v590_v21 = vmul.f32 %v1592_v20, %v588_v19  ;;  %vm596_vm3 = vweird.f32 %v1592_v20 }
  0xbe   : > { %vm597_vm5 = vmor %vm595_vm4, %vm596_vm3 }
  0xbf   : > { %v591_v22 = vmul.f32 %v1592_v20, %v590_v21  ;;  %v851_v36 = vpop.permute.xlu1 %850 }
  0xc1   : > { %v592_v24 = vmul.f32 0.5, %v591_v22 }
  0xc3   : > { %v593_v26 = vsub.f32 1.5, %v592_v24 }
  0xc4   : > { %v651_v37 = vpop.permute.xlu0 %650 }
  0xc5   : > { %v594_v27 = vmul.f32 %v1592_v20, %v593_v26 }
  0xc7   : > { %v598_v29 = vsel %vm597_vm5, %v1592_v20, %v594_v27 }
  0xc8   : > { %v599_v30 = vmul.f32 %v598_v29, %v1925_v2 }
  0xca   : > { %v604_v31 = vmul.f32 %v602_v28, %v599_v30 }
  0xcc   : > { %v605_v32 = vpack.c.bf16 %v604_v31, %v604_v31  ;;  %v770_v54 = vpop.permute.xlu0 %769 }
  0xce   : > { %1408 = vmatmul.msk.bf16.vlgmr.msra.gmra.mxu0 %vm576_vm1, %v605_v32 }
  0xd4   : > { %v671_v61 = vpop.permute.xlu0 %670 }
 0x14b   : > { %v1971_v38 = vpop.f32.mrf.mxu0 }
 0x14c   : > { %v853_v39 = vmul.f32 %v851_v36, %v1971_v38  ;;  %v780_v40 = vmul.f32 %v778_v33, %v1971_v38  ;;  %v653_v41 = vmul.f32 %v651_v37, %v1971_v38  ;;  %v681_v43 = vmul.f32 %v679_v34, %v1971_v38 }
 0x14d   : > { %v934_v45 = vmul.f32 %v932_v44, %v1971_v38  ;;  %v702_v46 = vmul.f32 %v1971_v38, %v1930_v6  ;;  %v648_v48 = vmul.f32 %v646_v47, %v1971_v38  ;;  %v643_v50 = vmul.f32 %v641_v35, %v1971_v38  ;;  %v924_v6 = vpop.permute.xlu0 %923 }
 0x14e   : > { %855 = vrot.lane.b32.xlu0 %v853_v39, %s1719_s17  ;;  %782 = vrot.lane.b32.xlu1 %v780_v40, %s1719_s17  ;;  %v772_v57 = vmul.f32 %v770_v54, %v1971_v38  ;;  %v673_v0 = vmul.f32 %v671_v61, %v1971_v38  ;;  %v697_v26 = vmul.f32 %v1971_v38, %v1946_v10  ;;  %v563_v54 = vlaneseq }
 0x14f   : > { %655 = vrot.lane.b32.xlu2 %v653_v41, %s1719_s17 }
 0x153   : > { %v636_v42 = vpop.f32.mrf.mxu0 }
 0x155   : > { %v847_v13 = vpop.permute.xlu0 %846 }
 0x156   : > { %683 = vrot.lane.b32.xlu1 %v681_v43, %s1719_s17  ;;  %v849_v25 = vmul.f32 %v847_v13, %v1971_v38 }
 0x157   : > { %773 = vrot.lane.b32.xlu2 %v1942_v8, %s1720_s18 }
 0x15e   : > { %936 = vrot.lane.b32.xlu1 %v934_v45, %s1719_s17 }
 0x15f   : > { %674 = vrot.lane.b32.xlu2 %v1942_v8, %s1721_s21 }
 0x166   : > { %698 = vrot.lane.b32.xlu1 %v1942_v8, %s1719_s17 }
 0x167   : > { %927 = vrot.lane.b32.xlu2 %v1942_v8, %s1722_s0  ;;  %v926_v8 = vmul.f32 %v924_v6, %v1971_v38 }
 0x16e   : > { %704 = vrot.lane.b32.xlu1 %v702_v46, %s1719_s17  ;;  %s1730_s17 = smov 72  }
 0x1a9   : > { %v656_v49 = vpop.permute.xlu2 %655 }
 0x1aa   : > { %v658_v51 = vadd.f32 %v656_v49, %v648_v48 }
 0x1ac   : > { %v1563_v52 = vpack.i.bf16 %v658_v51, %v643_v50 }
 0x1ae   : > { %1564 = vrot.lane.b32.xlu2 %v1563_v52, %s1723_s22 }
 0x1b1   : > { %v774_v53 = vpop.permute.xlu2 %773 }
 0x1b2   : > { %v776_v55 = vmul.f32 %v774_v53, %v1971_v38 }
 0x1b6   : > { %842 = vrot.lane.b32.xlu2 %v1946_v10, %s1717_s12 }
 0x1b9   : > { %v675_v59 = vpop.permute.xlu2 %674 }
 0x1ba   : > { %v677_v62 = vmul.f32 %v675_v59, %v1971_v38 }
 0x1c0   : > { %v783_v56 = vpop.permute.xlu1 %782  ;;  %v856_v23 = vpop.permute.xlu0 %855 }
 0x1c1   : > { %v785_v58 = vadd.f32 %v783_v56, %v776_v55  ;;  %v928_v4 = vpop.permute.xlu2 %927  ;;  %v858_v28 = vadd.f32 %v856_v23, %v849_v25  ;;  %v564_v55 = vshrl.u32 %v563_v54, 7  ;;  %v566_v56 = vand.u32 127, %v563_v54 }
 0x1c2   : > { %v930_v5 = vmul.f32 %v928_v4, %v1971_v38 }
 0x1c3   : > { %v1568_v60 = vpack.i.bf16 %v785_v58, %v772_v57  ;;  %vm567_vm8 = vcmp.le.s32.totalorder %v566_v56, %v564_v55  ;;  %v1588_v57 = vld [vmem:[%s2159_s14] ss:$0 sm:$0xff]  ;;  %v1728_v58 = vmov -1e+09  }
 0x1c4   : > { %v568_v59 = vsel %vm567_vm8, 0.0, %v1728_v58 }
 0x1c5   : > { %1569 = vrot.lane.b32.xlu2 %v1568_v60, %s1724_s29  ;;  %v573_v60 = vadd.f32 %v1588_v57, %v568_v59 }
 0x1c8   : > { %v684_v63 = vpop.permute.xlu1 %683 }
 0x1c9   : > { %v686_v1 = vadd.f32 %v684_v63, %v677_v62 }
 0x1cb   : > { %v1573_v3 = vpack.i.bf16 %v686_v1, %v673_v0 }
 0x1cd   : > { %1574 = vrot.lane.b32.xlu0 %v1573_v3, %s1725_s30 }
 0x1d0   : > { %v937_v7 = vpop.permute.xlu1 %936 }
 0x1d1   : > { %v939_v9 = vadd.f32 %v937_v7, %v930_v5 }
 0x1d3   : > { %v1578_v11 = vpack.i.bf16 %v939_v9, %v926_v8  ;;  %v638_v8 = vpack.c.bf16 %v1971_v38, %v1971_v38 }
 0x1d5   : > { %1579 = vrot.lane.b32.xlu1 %v1578_v11, %s1726_s11  ;;  %v745_v9 = vunpack.c.l.b16 %v638_v8  ;;  %v1463_v8 = vld [vmem:[%s1902_s10] sm:$0xff] }
 0x1d7   : > { %v746_v11 = vpack.c.b16 %v745_v9, %v745_v9 }
 0x1d8   : > { %v699_v12 = vpop.permute.xlu1 %698 }
 0x1d9   : > { %v701_v19 = vmul.f32 %v699_v12, %v1971_v38 }
 0x1e0   : > { %v705_v18 = vpop.permute.xlu1 %704 }
 0x1e1   : > { %v707_v22 = vadd.f32 %v705_v18, %v701_v19 }
 0x1e3   : > { %v708_v30 = vsel %vm667_vm6, %v697_v26, %v707_v22 }
 0x1e4   : > { %v709_v32 = vpack.c.bf16 %v708_v30, %v708_v30 }
 0x208   : > { %v1565_v14 = vpop.permute.xlu2 %1564 }
 0x209   : > { %v1567_v15 = vunpack.i.h.bf16 %v1565_v14  ;;  %v1566_v17 = vunpack.i.l.bf16 %v1565_v14 }
 0x20b   : > { %v668_v20 = vsel %vm667_vm6, %v1566_v17, %v1567_v15 }
 0x20c   : > { %v669_v21 = vpack.c.bf16 %v668_v20, %v668_v20 }
 0x20e   : > { %v715_v24 = vsel %vm710_vm7, %v669_v21, 0 }
 0x20f   : > { %724 = vmatpush.bf16.xpose.msra.mxu1 %v715_v24  ;;  %806 = vmatpush.bf16.xpose.msra.mxu3 %v715_v24 }
 0x210   : > { %v843_v27 = vpop.permute.xlu2 %842 }
 0x211   : > { %v845_v29 = vmul.f32 %v843_v27, %v1971_v38 }
 0x213   : > { %v1583_v31 = vpack.i.bf16 %v858_v28, %v845_v29 }
 0x215   : > { %1584 = vrot.lane.b32.xlu2 %v1583_v31, %s1727_s23 }
 0x216   : > { %1409 = vmatmul.msk.bf16.vlgmr.msra.gmra.mxu1 %vm710_vm7, %v709_v32 }
 0x21f   : > { %v1570_v33 = vpop.permute.xlu2 %1569 }
 0x220   : > { %v1572_v34 = vunpack.i.h.bf16 %v1570_v33  ;;  %v1571_v35 = vunpack.i.l.bf16 %v1570_v33 }
 0x222   : > { %v794_v36 = vsel %vm667_vm6, %v1571_v35, %v1572_v34 }
 0x223   : > { %v795_v37 = vpack.c.bf16 %v794_v36, %v794_v36 }
 0x225   : > { %1411 = vmatmul.msk.bf16.vlgmr.msra.gmra.mxu3 %vm710_vm7, %v795_v37 }
 0x23f   : > { %v1575_v10 = vpop.permute.xlu0 %1574 }
 0x240   : > { %v1577_v39 = vunpack.i.h.bf16 %v1575_v10  ;;  %v1576_v40 = vunpack.i.l.bf16 %v1575_v10 }
 0x242   : > { %v695_v41 = vsel %vm667_vm6, %v1576_v40, %v1577_v39 }
 0x243   : > { %v696_v42 = vpack.c.bf16 %v695_v41, %v695_v41 }
 0x245   : > { %v873_v43 = vsel %vm710_vm7, %v696_v42, 0 }
 0x246   : > { %882 = vmatpush.bf16.xpose.msrb.mxu0 %v873_v43  ;;  %960 = vmatpush.bf16.xpose.msrb.mxu3 %v873_v43 }
 0x247   : > { %v1580_v44 = vpop.permute.xlu1 %1579 }
 0x248   : > { %v1582_v45 = vunpack.i.h.bf16 %v1580_v44  ;;  %v1581_v46 = vunpack.i.l.bf16 %v1580_v44 }
 0x24a   : > { %v948_v47 = vsel %vm667_vm6, %v1581_v46, %v1582_v45 }
 0x24b   : > { %v949_v48 = vpack.c.bf16 %v948_v47, %v948_v47 }
 0x24d   : > { %1415 = vmatmul.msk.bf16.vlgmr.msrb.gmra.mxu3 %vm710_vm7, %v949_v48 }
 0x26f   : > { %v1585_v49 = vpop.permute.xlu2 %1584 }
 0x270   : > { %v1587_v50 = vunpack.i.h.bf16 %v1585_v49  ;;  %v1586_v51 = vunpack.i.l.bf16 %v1585_v49 }
 0x272   : > { %v867_v52 = vsel %vm667_vm6, %v1586_v51, %v1587_v50 }
 0x273   : > { %v868_v53 = vpack.c.bf16 %v867_v52, %v867_v52 }
 0x275   : > { %1413 = vmatmul.msk.bf16.vlgmr.msrb.gmra.mxu0 %vm710_vm7, %v868_v53 }
 0x293   : > { %v726_v61 = vpop.f32.mrf.mxu1 }
 0x294   : > { %v730_v62 = vmul.f32 0.35355338, %v726_v61 }
 0x296   : > { %v731_v63 = vadd.f32 %v730_v62, %v573_v60 }
 0x298   : > { %v732_v0 = vsel %vm710_vm7, %v731_v63, -inf }
 0x299   : > { %733 = vmax.xlane.f32.xlu0 %v732_v0 }
 0x29b   : > { %v728_v1 = vpop.f32.mrf.mxu1 }
 0x2a8   : > { %v808_v3 = vpop.f32.mrf.mxu3 }
 0x2a9   : > { %v812_v4 = vmul.f32 0.35355338, %v808_v3 }
 0x2ab   : > { %v813_v5 = vadd.f32 %v812_v4, %v573_v60 }
 0x2ad   : > { %v814_v6 = vsel %vm710_vm7, %v813_v5, -inf }
 0x2ae   : > { %815 = vmax.xlane.f32.xlu1 %v814_v6 }
 0x2b0   : > { %v810_v7 = vpop.f32.mrf.mxu3 }
 0x2b1   : > { %v1464_v7 = vld [vmem:[%s1902_s10 + $0x8] sm:$0xff] }
 0x2b2   : > { %1039 = vmatpush.bf16.msra.mxu0 %v1464_v7 }
 0x2b6   : > { %1040 = vmatpush.bf16.msra.mxu0 %v1463_v8 }
 0x2c7   : > { %747 = vrot.lane.b32.xlu1 %v746_v11, %s1729_s25 }
 0x2d0   : > { %v962_v12 = vpop.f32.mrf.mxu3 }
 0x2d1   : > { %v966_v13 = vmul.f32 0.35355338, %v962_v12 }
 0x2d3   : > { %v967_v14 = vadd.f32 %v966_v13, %v573_v60 }
 0x2d5   : > { %v968_v15 = vsel %vm710_vm7, %v967_v14, -inf }
 0x2d6   : > { %969 = vmax.xlane.f32.xlu2 %v968_v15 }
 0x2d8   : > { %v964_v17 = vpop.f32.mrf.mxu3 }
 0x2f2   : > { %v884_v18 = vpop.f32.mrf.mxu0 }
 0x2f3   : > { %v888_v19 = vmul.f32 0.35355338, %v884_v18 }
 0x2f5   : > { %v889_v20 = vadd.f32 %v888_v19, %v573_v60 }
 0x2f7   : > { %v890_v21 = vsel %vm710_vm7, %v889_v20, -inf }
 0x2f8   : > { %891 = vmax.xlane.f32.xlu0 %v890_v21 }
 0x2fa   : > { %v886_v22 = vpop.f32.mrf.mxu0 }
 0x30c   : > { %v734_v23 = vpop.xlane.xlu0 %733 }
 0x30d   : > { %v735_v38 = vsub.f32 %v731_v63, %v734_v23  ;;  %v1466_v23 = vld [vmem:[%s1907_s19 + $0x8] sm:$0xff] }
 0x30f   : > { %v736_v24 = vmul.f32 1.442695, %v735_v38  ;;  %v1465_v38 = vld [vmem:[%s1907_s19] sm:$0xff] }
 0x311   : > { %1593 = vpow2.f32 %v736_v24 }
 0x317   : > { %v1594_v25 = vpop.eup %1593 }
 0x318   : > { %v738_v26 = vsel %vm710_vm7, %v1594_v25, 0.0 }
 0x319   : > { %739 = vadd.xlane.f32.xlu2 %v738_v26 }
 0x321   : > { %v816_v27 = vpop.xlane.xlu1 %815 }
 0x322   : > { %v817_v28 = vsub.f32 %v813_v5, %v816_v27 }
 0x324   : > { %v818_v29 = vmul.f32 1.442695, %v817_v28 }
 0x326   : > { %1595 = vpow2.f32 %v818_v29 }
 0x32c   : > { %v1596_v30 = vpop.eup %1595 }
 0x32d   : > { %v820_v31 = vsel %vm710_vm7, %v1596_v30, 0.0 }
 0x32e   : > { %821 = vadd.xlane.f32.xlu0 %v820_v31 }
 0x339   : > { %v748_v32 = vpop.permute.xlu1 %747 }
 0x33a   : > { %v754_v33 = vsel %vm752_vm9, %v748_v32, 0 }
 0x33b   : > { %763 = vmatpush.bf16.msra.mxu2 %v754_v33 }
 0x33f   : > { %836 = vmatpush.bf16.msrb.mxu2 %v754_v33 }
 0x349   : > { %v970_v34 = vpop.xlane.xlu2 %969 }
 0x34a   : > { %v971_v35 = vsub.f32 %v967_v14, %v970_v34 }
 0x34c   : > { %v972_v36 = vmul.f32 1.442695, %v971_v35 }
 0x34e   : > { %1597 = vpow2.f32 %v972_v36 }
 0x354   : > { %v1598_v37 = vpop.eup %1597 }
 0x355   : > { %v974_v10 = vsel %vm710_vm7, %v1598_v37, 0.0 }
 0x356   : > { %975 = vadd.xlane.f32.xlu2 %v974_v10 }
 0x36b   : > { %v892_v39 = vpop.xlane.xlu0 %891 }
 0x36c   : > { %v893_v40 = vsub.f32 %v889_v20, %v892_v39  ;;  %v1470_v39 = vld [vmem:[%s1913_s24 + $0x18] sm:$0xff] }
 0x36d   : > { %1158 = vmatpush.bf16.msra.mxu3 %v1470_v39 }
 0x36e   : > { %v894_v41 = vmul.f32 1.442695, %v893_v40  ;;  %902 = vrot.lane.b32.xlu2 %v746_v11, %s1730_s17  ;;  %v1469_v40 = vld [vmem:[%s1913_s24 + $0x10] sm:$0xff] }
 0x370   : > { %1599 = vpow2.f32 %v894_v41  ;;  %v1468_v41 = vld [vmem:[%s1913_s24 + $0x8] sm:$0xff] }
 0x371   : > { %1159 = vmatpush.bf16.msra.mxu3 %v1469_v40 }
 0x375   : > { %1160 = vmatpush.bf16.msra.mxu3 %v1468_v41 }
 0x376   : > { %v1600_v42 = vpop.eup %1599 }
 0x377   : > { %v896_v43 = vsel %vm710_vm7, %v1600_v42, 0.0 }
 0x378   : > { %897 = vadd.xlane.f32.xlu0 %v896_v43 }
 0x38c   : > { %v740_v44 = vpop.xlane.xlu2 %739 }
 0x38d   : > { %1601 = vrcp.f32 %v740_v44 }
 0x393   : > { %v1602_v45 = vpop.eup %1601 }
 0x394   : > { %v742_v46 = vmul.f32 %v1602_v45, %v1594_v25 }
 0x396   : > { %v743_v47 = vpack.c.bf16 %v742_v46, %v742_v46  ;;  %v1467_v46 = vld [vmem:[%s1913_s24] sm:$0xff] }
 0x397   : > { %1161 = vmatpush.bf16.msra.mxu3 %v1467_v46 }
 0x398   : > { %1410 = vmatmul.msk.bf16.vlgmr.msra.gmra.mxu2 %vm710_vm7, %v743_v47 }
 0x3a1   : > { %v822_v48 = vpop.xlane.xlu0 %821 }
 0x3a2   : > { %1603 = vrcp.f32 %v822_v48 }
 0x3a8   : > { %v1604_v49 = vpop.eup %1603 }
 0x3a9   : > { %v824_v50 = vmul.f32 %v1604_v49, %v1596_v30 }
 0x3ab   : > { %v825_v51 = vpack.c.bf16 %v824_v50, %v824_v50 }
 0x3ad   : > { %1412 = vmatmul.msk.bf16.vlgmr.msrb.gmra.mxu2 %vm710_vm7, %v825_v51 }
 0x3c9   : > { %v976_v52 = vpop.xlane.xlu2 %975 }
 0x3ca   : > { %1605 = vrcp.f32 %v976_v52 }
 0x3d0   : > { %v1606_v53 = vpop.eup %1605 }
 0x3d1   : > { %v978_v54 = vmul.f32 %v1606_v53, %v1598_v37  ;;  %v903_v55 = vpop.permute.xlu2 %902 }
 0x3d2   : > { %v908_v56 = vsel %vm752_vm9, %v903_v55, 0 }
 0x3d3   : > { %v979_v57 = vpack.c.bf16 %v978_v54, %v978_v54  ;;  %917 = vmatpush.bf16.msrb.mxu1 %v908_v56  ;;  %990 = vmatpush.bf16.msra.mxu2 %v908_v56 }
 0x3d6   : > { %1416 = vmatmul.msk.bf16.vlgmr.msra.gmra.mxu2 %vm710_vm7, %v979_v57 }
 0x3d7   : > { %1096 = vmatpush.bf16.msra.mxu1 %v1466_v23 }
 0x3db   : > { %1097 = vmatpush.bf16.msra.mxu1 %v1465_v38 }
 0x3eb   : > { %v898_v58 = vpop.xlane.xlu0 %897 }
 0x3ec   : > { %1607 = vrcp.f32 %v898_v58 }
 0x3f2   : > { %v1608_v59 = vpop.eup %1607 }
 0x3f3   : > { %v900_v60 = vmul.f32 %v1608_v59, %v1600_v42 }
 0x3f5   : > { %v901_v61 = vpack.c.bf16 %v900_v60, %v900_v60 }
 0x3f7   : > { %1414 = vmatmul.msk.bf16.vlgmr.msrb.gmra.mxu1 %vm710_vm7, %v901_v61 }
 0x41b   : > { %v765_v62 = vpop.f32.mrf.mxu2 }
 0x423   : > { %v767_v63 = vpop.f32.mrf.mxu2 }
 0x430   : > { %v838_v0 = vpop.f32.mrf.mxu2 }
 0x431   : > { %997 = vrot.lane.b32.xlu0 %v838_v0, %s1713_s2 }
 0x438   : > { %v840_v1 = vpop.f32.mrf.mxu2 }
 0x459   : > { %v992_v3 = vpop.f32.mrf.mxu2 }
 0x461   : > { %v994_v4 = vpop.f32.mrf.mxu2 }
 0x474   : > { %v919_v5 = vpop.f32.mrf.mxu1 }
 0x475   : > { %1001 = vrot.lane.b32.xlu1 %v919_v5, %s1717_s12 }
 0x47c   : > { %v921_v6 = vpop.f32.mrf.mxu1 }
 0x47d   : > { %1005 = vrot.lane.b32.xlu1 %v992_v3, %s1714_s4 }
 0x4a3   : > { %v998_v11 = vpop.permute.xlu0 %997 }
 0x4a4   : > { %v1008_v12 = vsel %vm710_vm7, %v765_v62, %v998_v11 }
 0x4e7   : > { %v1002_v9 = vpop.permute.xlu1 %1001 }
 0x4e8   : > { %v1010_v13 = vsel %vm1009_vm10, %v1008_v12, %v1002_v9 }
 0x4ef   : > { %v1006_v14 = vpop.permute.xlu1 %1005 }
 0x4f0   : > { %v1012_v15 = vsel %vm1011_vm11, %v1010_v13, %v1006_v14 }
 0x4f1   : > { %v1013_v17 = vpack.c.bf16 %v1012_v15, %v1012_v15 }
 0x4f3   : > { %1425 = vmatmul.msk.bf16.vlgmr.msra.gmra.mxu0 %vm576_vm1, %v1013_v17 }
 0x570   : > { %v1042_v18 = vpop.f32.mrf.mxu0 }
 0x571   : > { %v1046_v19 = vadd.f32 %v1042_v18, %v1925_v2  ;;  %v1047_v2 = vld [vmem:[%s549_s15] sm:$0x1]  ;;  %s2160_s15 = sld [smem:[#allocation21_spill]] (!%p1452_p1) }
 0x572   : > { %v1065_v31 = vadd.f32 1.0, %v1047_v2 }
 0x573   : > { %v1048_v20 = vmul.f32 %v1046_v19, %v1046_v19 }
 0x574   : > { %v1067_v34 = vperm.slane %v1065_v31, 0 }
 0x575   : > { %v1049_v21 = vsel %vm576_vm1, %v1048_v20, 0.0 }
 0x576   : > { %1050 = vadd.xlane.f32.xlu2 %v1049_v21 }
 0x578   : > { %v1044_v22 = vpop.f32.mrf.mxu0 }
 0x5e9   : > { %v1051_v24 = vpop.xlane.xlu2 %1050 }
 0x5ea   : > { %v1052_v25 = vmul.f32 %v1051_v24, %v1956_v16 }
 0x5ec   : > { %v1053_v26 = vadd.f32 1e-06, %v1052_v25 }
 0x5ee   : > { %1609 = vrsqrt.f32 %v1053_v26  ;;  %vm1060_vm13 = vweird.f32 %v1053_v26 }
 0x5f4   : > { %v1610_v27 = vpop.eup %1609 }
 0x5f5   : > { %v1055_v28 = vmul.f32 %v1610_v27, %v1053_v26  ;;  %vm1061_vm12 = vweird.f32 %v1610_v27 }
 0x5f6   : > { %vm1062_vm14 = vmor %vm1060_vm13, %vm1061_vm12 }
 0x5f7   : > { %v1056_v29 = vmul.f32 %v1610_v27, %v1055_v28 }
 0x5f9   : > { %v1057_v30 = vmul.f32 0.5, %v1056_v29 }
 0x5fb   : > { %v1058_v32 = vsub.f32 1.5, %v1057_v30 }
 0x5fd   : > { %v1059_v33 = vmul.f32 %v1610_v27, %v1058_v32 }
 0x5ff   : > { %v1063_v35 = vsel %vm1062_vm14, %v1610_v27, %v1059_v33 }
 0x600   : > { %v1064_v36 = vmul.f32 %v1063_v35, %v1046_v19 }
 0x602   : > { %v1069_v37 = vmul.f32 %v1067_v34, %v1064_v36 }
 0x604   : > { %v1070_v10 = vpack.c.bf16 %v1069_v37, %v1069_v37 }
 0x606   : > { %1434 = vmatmul.msk.bf16.vlgmr.msra.gmra.mxu1 %vm576_vm1, %v1070_v10 }
 0x683   : > { %v1099_v42 = vpop.f32.mrf.mxu1 }
 0x684   : > { %1113 = vrot.lane.b32.xlu0 %v1099_v42, %s1731_s26  ;;  %v1104_v44 = vmul.f32 0.044715, %v1099_v42  ;;  %v1103_v52 = vmul.f32 0.5, %v1099_v42 }
 0x686   : > { %v1105_v45 = vmul.f32 %v1104_v44, %v1099_v42 }
 0x688   : > { %v1106_v47 = vmul.f32 %v1105_v45, %v1099_v42 }
 0x68a   : > { %v1107_v48 = vadd.f32 %v1106_v47, %v1099_v42 }
 0x68b   : > { %v1101_v43 = vpop.f32.mrf.mxu1 }
 0x68c   : > { %v1108_v49 = vmul.f32 0.7978846, %v1107_v48 }
 0x68e   : > { %1611 = vtanh.f32 %v1108_v49 }
 0x694   : > { %v1612_v50 = vpop.eup %1611 }
 0x695   : > { %v1110_v51 = vadd.f32 1.0, %v1612_v50 }
 0x697   : > { %v1111_v53 = vmul.f32 %v1110_v51, %v1103_v52 }
 0x6f6   : > { %v1114_v54 = vpop.permute.xlu0 %1113 }
 0x6f7   : > { %v1116_v55 = vmul.f32 %v1114_v54, %v1111_v53 }
 0x6f9   : > { %v1117_v56 = vpack.c.bf16 %v1116_v55, %v1116_v55 }
 0x6fb   : > { %1451 = vmatmul.msk.bf16.vlgmr.msra.gmra.mxu3 %vm1150_vm15, %v1117_v56 }
 0x77e   : > { %v1163_v57 = vpop.f32.mrf.mxu3 }
 0x77f   : > { %v1167_v58 = vadd.f32 %v1163_v57, %v1046_v19 }
 0x781   : > { %1168 = vst.msk [vmem:[#allocation2] sm:$0xff] %vm576_vm1, %v1167_v58 }
 0x782   : > { %1172 = sbr.rel (%p1452_p1) target bundleno = 2073 (0x819), region = 72 }
 0x786   : > { %v1165_v59 = vpop.f32.mrf.mxu3 }
 0x787   : > { %v1174_v60 = vmul.f32 %v1167_v58, %v1167_v58  ;;  %v1173_v4 = vld [vmem:[%s2160_s15] sm:$0x1] }
 0x788   : > { %v1191_v7 = vadd.f32 1.0, %v1173_v4 }
 0x789   : > { %v1175_v61 = vsel %vm576_vm1, %v1174_v60, 0.0 }
 0x78a   : > { %1176 = vadd.xlane.f32.xlu0 %v1175_v61  ;;  %v1193_v11 = vperm.slane %v1191_v7, 0 }
 0x7fd   : > { %v1177_v62 = vpop.xlane.xlu0 %1176 }
 0x7fe   : > { %v1178_v63 = vmul.f32 %v1177_v62, %v1956_v16 }
 0x800   : > { %v1179_v0 = vadd.f32 1e-06, %v1178_v63 }
 0x802   : > { %1613 = vrsqrt.f32 %v1179_v0  ;;  %vm1186_vm2 = vweird.f32 %v1179_v0 }
 0x808   : > { %v1614_v1 = vpop.eup %1613 }
 0x809   : > { %v1181_v3 = vmul.f32 %v1614_v1, %v1179_v0  ;;  %vm1187_vm0 = vweird.f32 %v1614_v1 }
 0x80a   : > { %vm1188_vm3 = vmor %vm1186_vm2, %vm1187_vm0 }
 0x80b   : > { %v1182_v5 = vmul.f32 %v1614_v1, %v1181_v3 }
 0x80d   : > { %v1183_v6 = vmul.f32 0.5, %v1182_v5 }
 0x80f   : > { %v1184_v8 = vsub.f32 1.5, %v1183_v6 }
 0x811   : > { %v1185_v9 = vmul.f32 %v1614_v1, %v1184_v8 }
 0x813   : > { %v1189_v12 = vsel %vm1188_vm3, %v1614_v1, %v1185_v9 }
 0x814   : > { %v1190_v16 = vmul.f32 %v1189_v12, %v1167_v58 }
 0x816   : > { %v1195_v13 = vmul.f32 %v1193_v11, %v1190_v16 }
 0x818   : > { %1196 = vst.msk [vmem:[%s508_s13] sm:$0xff] %vm576_vm1, %v1195_v13 }
 0x819 PF: > { %s2161_s20 = sld [smem:[#allocation9_spill]]  ;;  %s1210_s11 = sshll.u32 %s508_s13, 4  ;;  %s1211_s11 = int_to_ptr.vmem [resolvable:$true] %s1210_s11 }
 0x81a   : > { %s2162_s4 = sld [smem:[#allocation7_spill]] }
 0x81b   : > { %s2164_s22 = sld [smem:[#allocation22_spill]] }
 0x81f   : > { %s1454_s18 = sshll.u32 %s2161_s20, 3 }
 0x820   : > { %s2166_s28 = sand.u32 1, %s2162_s4  }
 0x821   : > { %s2165_s29 = smov %s2164_s22  ;;  %s1208_s30 = scalar_lea.hbm %s2164_s22, %s1454_s18 }
 0x822   : > { %s1212_s23 = sshll.u32 %s1208_s30, 4  ;;  %s1198_s27 = scalar_lea.sflag [#allocation4], %s2166_s28  ;;  %s1213_s23 = int_to_ptr.hbm [resolvable:$true] %s1212_s23 }
 0x823   : > { %s1629_s14 = sshra.s32 %s1213_s23, 4  ;;  %s1635_s2 = scalar_lea.hbm %s2165_s29, 16  ;;  %s1630_s14 = int_to_ptr.hbm [resolvable:$true] %s1629_s14 }
 0x824   : > { %s1631_s25 = scalar_lea.hbm %s1630_s14, 8  ;;  %p1636_p6 = scmp.lt.s32.totalorder %s1630_s14, %s2165_s29 }
 0x825   : > { %p1632_p2 = scmp.ne.s32.totalorder %s1630_s14, %s1631_s25  ;;  %p1637_p7 = scmp.lt.s32.totalorder %s1635_s2, %s1631_s25 }
 0x827   : > { %p1633_p4 = pnand %p1632_p2, %p1841_p3  ;;  %p1638_p8 = por %p1637_p7, %p1636_p6 }
 0x829   : > { %p1634_p5 = pneg %p1633_p4 }
 0x82b   : > { %p1639_p10 = pnand %p1638_p8, %p1634_p5 }
 0x82d   : > { %1642 = shalt.err (!%p1639_p10)
}
 0x82e   : > { %1471 = dma.vmem_to_hbm [thread:$0]  (%p1841_p3), %s1211_s11, 128, %s1213_s23, %s1198_s27  }
 0x82f PF: > { %s2167_s16 = sld [smem:[#allocation12_spill]] }
 0x830   : > { %s2168_s13 = sld [smem:[#allocation6_spill]] }
 0x835   : > { %p1477_p11 = scmp.ge.s32.totalorder %s2167_s16, 2 }
 0x836   : > { %s1224_s15 = sand.u32 1, %s2168_s13  }
 0x837   : > { %p1474_p12 = pnand %p1477_p11, %p1851_p9  ;;  %s1225_s20 = scalar_lea.sflag [#allocation4], %s1224_s15 }
 0x839   : > { %p1475_p13 = pneg %p1474_p12 }
 0x83b   : > { %1676 = dma.done.wait (%p1475_p13), %s1225_s20, 128  }
 0x83c   : > { %1678 = vsyncadd (%p1475_p13), %s1225_s20, 4294967168  ;;  %s24_s24 = sadd.s32 1, %s2167_s16   ;;  %s2170_s17 = sld [smem:[#allocation7_spill]] }
 0x83d   : > { %p21_p0 = scmp.ge.s32.totalorder %s24_s24, 6   ;;  %s2171_s18 = sld [smem:[#allocation8_spill]] }
 0x83e   : > { %s2172_s19 = sld [smem:[#allocation17_spill]] }
 0x83f   : > { %s2173_s20 = sld [smem:[#allocation10_spill]]  ;;  %23 = sbr.rel (!%p21_p0) target bundleno = 11 (0xb), region = 134 }
 0x840   : > { %s2174_s21 = sld [smem:[#allocation11_spill]] }
 0x841   : > { %s2175_s22 = sld [smem:[#allocation13_spill]] }
 0x842   : > { %s2176_s23 = sld [smem:[#allocation15_spill]] }
 0x844   :  { %1231 = vsyncpa [#allocation4], 1 }
 0x845   :  { %1233 = vsyncpa [#allocation4 + $0x1], 1 }

</bundles_post_ra>
